<compile_context>
chip_gen: v6e
topology: v6e:2x2x1
jax: 0.10.0
libtpu: 0.0.40
codegen_flags: <defaults>
</compile_context>

<pallas_src>
import jax
import jax.numpy as jnp
import numpy as np
from jax.experimental import pallas as pl
from jax.experimental.pallas import tpu as pltpu

IMG_D = 1280                     # backbone feature width
ENC_D = 128                      # speed / command encoder width
FEAT_D = IMG_D + 2 * ENC_D       # 1536  (== torch.cat([img, speed, command], -1))
SP_H = 256                       # speed_prediction hidden width
AF_H = 512                       # action_head hidden / output width
AL_H = 512                       # alpha hidden width
HID = SP_H + AF_H + AL_H         # 1280  fused hidden width of all heads
OUT_W = 128                      # lane-dense packed output width
HBLK = 256                       # hidden-dim block (grid axis); multiple of 128
NBLK = HID // HBLK               # 5 grid steps
# packed output columns: 0 = alpha | 1:3 = mean | 3:5 = std | 5 = pred_speed


# ----------------------------------------------------------------------------
# Fused kernel: backbone stand-in + encoders (step 0) + blocked fused heads.
# ----------------------------------------------------------------------------
def fused_kernel(x_ref, pool_ref, spd_ref, cmd_ref,
                 wp_ref, bp_ref, wj_ref, bj_ref,
                 wse1, bse1, wse2, bse2,
                 wce1, bce1, wce2, bce2,
                 w1_ref, b1_ref, w2_ref, b2_ref,
                 o_ref, feat_sc, acc_sc):
    f32 = jnp.float32
    bf16 = jnp.bfloat16
    step = pl.program_id(0)

    def relu(v):
        return jnp.maximum(v, 0.0)

    # ---- step 0 only: backbone stand-in + encoder MLPs; stash bf16 features --
    @pl.when(step == 0)
    def _():
        # patch "conv" (matmul) + ReLU + global mean pool (block-diag matmul)
        # + projection to the 1280-wide image feature.
        h = relu(jnp.dot(x_ref[...].astype(bf16), wp_ref[...],
                         preferred_element_type=f32) + bp_ref[...])        # (Bp*nP, Dh)
        pooled = jnp.dot(pool_ref[...], h.astype(bf16),
                         preferred_element_type=f32)                       # (Bp, Dh)
        img = jnp.dot(pooled.astype(bf16), wj_ref[...],
                      preferred_element_type=f32) + bj_ref[...]            # (Bp, IMG_D)

        s1 = relu(jnp.dot(spd_ref[...].astype(bf16), wse1[...],
                          preferred_element_type=f32) + bse1[...])
        spd_enc = jnp.dot(s1.astype(bf16), wse2[...],
                          preferred_element_type=f32) + bse2[...]          # (Bp, ENC_D)

        c1 = relu(jnp.dot(cmd_ref[...].astype(bf16), wce1[...],
                          preferred_element_type=f32) + bce1[...])
        cmd_enc = jnp.dot(c1.astype(bf16), wce2[...],
                          preferred_element_type=f32) + bce2[...]          # (Bp, ENC_D)

        # features = torch.cat([img, speed, command], -1), stored bf16 in VMEM
        feat_sc[:, 0:IMG_D] = img.astype(bf16)
        feat_sc[:, IMG_D:IMG_D + ENC_D] = spd_enc.astype(bf16)
        feat_sc[:, IMG_D + ENC_D:FEAT_D] = cmd_enc.astype(bf16)
        acc_sc[...] = jnp.zeros_like(acc_sc)

    # ---- every step: one hidden block of the fused 2-layer head MLP ----------
    #   out += relu(feat @ W1[:, blk] + b1[blk]) @ W2[blk, :]
    h1 = relu(jnp.dot(feat_sc[...], w1_ref[...],
                      preferred_element_type=f32) + b1_ref[...])           # (Bp, HBLK)
    acc_sc[...] += jnp.dot(h1.astype(bf16), w2_ref[...],
                           preferred_element_type=f32)                     # (Bp, OUT_W)

    # ---- last step: add fused bias, apply elu(std)+1 on std lanes, store -----
    @pl.when(step == pl.num_programs(0) - 1)
    def _():
        raw = acc_sc[...] + b2_ref[...]
        lane = jax.lax.broadcasted_iota(jnp.int32, raw.shape, 1)
        # elu(x) + 1 == x + 1 (x > 0) else exp(x); clamp exp arg to avoid inf
        elu_p1 = jnp.where(raw > 0.0, raw + 1.0, jnp.exp(jnp.minimum(raw, 0.0)))
        o_ref[...] = jnp.where((lane >= 3) & (lane < 5), elu_p1, raw)


def base_expert_alt_forward(x_flat, pool_mat, spd_p, cmd_p, params):
    """params = [w_patch, b_patch, w_proj, b_proj, w_se1, b_se1, w_se2, b_se2,
                 w_ce1, b_ce1, w_ce2, b_ce2, W1, b1, W2, b2]"""
    Bp = pool_mat.shape[0]
    args = [x_flat, pool_mat, spd_p, cmd_p] + list(params)

    def const_spec(a):   # whole array in VMEM, fetched once (constant block idx)
        return pl.BlockSpec(a.shape, lambda c: (0, 0))

    in_specs = [const_spec(a) for a in args[:-4]]
    in_specs += [
        pl.BlockSpec((FEAT_D, HBLK), lambda c: (0, c)),   # W1  (1536, 1280) bf16
        pl.BlockSpec((1, HBLK),      lambda c: (0, c)),   # b1  (1, 1280)    f32
        pl.BlockSpec((HBLK, OUT_W),  lambda c: (c, 0)),   # W2  (1280, 128)  bf16
        const_spec(args[-1]),                             # b2  (1, 128)     f32
    ]
    out_spec = pl.BlockSpec((Bp, OUT_W), lambda c: (0, 0))

    # advisory cost estimate (latency-bound call; helps XLA overlap it)
    dp, dh = args[4].shape
    npatch = x_flat.shape[0]
    flops = 2 * (npatch * dp * dh + Bp * npatch * dh + Bp * dh * IMG_D
                 + 4 * Bp * ENC_D * ENC_D
                 + Bp * FEAT_D * HID + Bp * HID * OUT_W)
    bytes_accessed = sum(int(a.size) * a.dtype.itemsize for a in args) + Bp * OUT_W * 4
    cost = pl.CostEstimate(flops=int(flops), transcendentals=Bp * OUT_W,
                           bytes_accessed=int(bytes_accessed))

    return pl.pallas_call(
        fused_kernel,
        out_shape=jax.ShapeDtypeStruct((Bp, OUT_W), jnp.float32),
        grid_spec=pltpu.PrefetchScalarGridSpec(
            num_scalar_prefetch=0,
            grid=(NBLK,),
            in_specs=in_specs,
            out_specs=out_spec,
            scratch_shapes=[pltpu.VMEM((Bp, FEAT_D), jnp.bfloat16),   # features
                            pltpu.VMEM((Bp, OUT_W), jnp.float32)]),   # accumulator
        compiler_params=pltpu.CompilerParams(
            dimension_semantics=("arbitrary",)),                      # reduction axis
        cost_estimate=cost,
    )(*args)


# ----------------------------------------------------------------------------
# deterministic parameter init (PyTorch-style uniform(-1/sqrt(fan_in), ...))
# ----------------------------------------------------------------------------
def init_linear(key, fan_in, fan_out):
    kw, kb = jax.random.split(key)
    bound = 1.0 / np.sqrt(fan_in)
    w = jax.random.uniform(kw, (fan_in, fan_out), jnp.float32, -bound, bound)
    b = jax.random.uniform(kb, (1, fan_out), jnp.float32, -bound, bound)
    return w, b


def pad_rows(w, rows):
    return jnp.pad(w, ((0, rows - w.shape[0]), (0, 0)))


if __name__ == "__main__":
    # images (B,T,C,H,W), speed (B,1), command (B,4)
    B, T, C, H, W = 2, 1, 4, 16, 16
    P = 4                      # patch size of stand-in conv backbone
    Cin = T * C                # images.view(B, -1, H, W) channel count
    Dp = Cin * P * P           # 64
    Dh = 64                    # backbone hidden width
    Bp = 8                     # batch padded to a sublane multiple
    nP = (H // P) * (W // P)   # 16  -> Bp*nP == 128 rows for the patch matmul

    key = jax.random.PRNGKey(0)
    keys = jax.random.split(key, 16)

    images = jax.random.normal(keys[0], (B, T, C, H, W), jnp.float32)
    speed = jax.random.normal(keys[1], (B, 1), jnp.float32)
    command = jax.nn.one_hot(jnp.array([1, 3]), 4, dtype=jnp.float32)   # (B, 4)

    # backbone stand-in params
    w_patch, b_patch = init_linear(keys[2], Dp, Dh)
    w_proj, b_proj = init_linear(keys[3], Dh, IMG_D)
    # head params
    w_se1, b_se1 = init_linear(keys[4], 1, ENC_D)
    w_se2, b_se2 = init_linear(keys[5], ENC_D, ENC_D)
    w_ce1, b_ce1 = init_linear(keys[6], 4, ENC_D)
    w_ce2, b_ce2 = init_linear(keys[7], ENC_D, ENC_D)
    w_sp1, b_sp1 = init_linear(keys[8], FEAT_D, SP_H)
    w_sp2, b_sp2 = init_linear(keys[9], SP_H, 1)
    w_af1, b_af1 = init_linear(keys[10], FEAT_D, AF_H)
    w_af2, b_af2 = init_linear(keys[11], AF_H, AF_H)
    w_ap, b_ap = init_linear(keys[12], AF_H, 4)
    w_al1, b_al1 = init_linear(keys[13], FEAT_D, AL_H)
    w_al2, b_al2 = init_linear(keys[14], AL_H, 1)

    # ---- glue: NCHW -> non-overlapping patches (im2col), pad batch, flatten --
    x = images.reshape(B, Cin, H, W)                          # images.view(B, -1, H, W)
    x = x.reshape(B, Cin, H // P, P, W // P, P)
    x = x.transpose(0, 2, 4, 1, 3, 5).reshape(B, nP, Dp)      # (B, nP, Dp)
    x_pad = jnp.pad(x, ((0, Bp - B), (0, 0), (0, 0)))
    x_flat = x_pad.reshape(Bp * nP, Dp)                       # (128, 64)

    # block-diagonal mean-pool matrix: pooled = pool_mat @ relu(patch feats)
    pool_mat = (jnp.repeat(jnp.eye(Bp, dtype=jnp.float32), nP, axis=1)
                / float(nP)).astype(jnp.bfloat16)             # exact (1/16) in bf16

    # zero-pad narrow inputs / first-layer rows (exact math)
    spd_p = jnp.pad(speed, ((0, Bp - B), (0, ENC_D - 1)))
    cmd_p = jnp.pad(command, ((0, Bp - B), (0, ENC_D - 4)))
    w_se1p = pad_rows(w_se1, ENC_D)
    w_ce1p = pad_rows(w_ce1, ENC_D)

    # fused first layers of speed_pred / action_head / alpha (fan_out concat)
    w1 = jnp.concatenate([w_sp1, w_af1, w_al1], axis=1).astype(jnp.bfloat16)  # (1536,1280)
    b1 = jnp.concatenate([b_sp1, b_af1, b_al1], axis=1)                       # (1,1280) f32

    # fold action_features 2nd layer into action_pred (alpha uses features in Alt):
    #   (h_af @ w_af2 + b_af2) @ w_ap + b_ap == h_af @ (w_af2 @ w_ap) + (b_af2 @ w_ap + b_ap)
    w_ap_fold = w_af2 @ w_ap                                   # (512, 4)
    b_ap_fold = b_af2 @ w_ap + b_ap                            # (1, 4)

    # single fused final weight (HID, OUT_W); packed output cols:
    #   col 0 alpha | cols 1:5 action_pred (mean 1:3, std_raw 3:5) | col 5 pred_speed
    w2 = jnp.zeros((HID, OUT_W), jnp.float32)
    w2 = w2.at[0:SP_H, 5:6].set(w_sp2)
    w2 = w2.at[SP_H:SP_H + AF_H, 1:5].set(w_ap_fold)
    w2 = w2.at[SP_H + AF_H:HID, 0:1].set(w_al2)
    w2 = w2.astype(jnp.bfloat16)
    b2 = (jnp.zeros((1, OUT_W), jnp.float32)
          .at[:, 0:1].set(b_al2).at[:, 1:5].set(b_ap_fold).at[:, 5:6].set(b_sp2))

    bf = lambda a: a.astype(jnp.bfloat16)    # all weights bf16, f32 acc in-kernel
    params = [bf(w_patch), b_patch, bf(w_proj), b_proj,
              bf(w_se1p), b_se1, bf(w_se2), b_se2,
              bf(w_ce1p), b_ce1, bf(w_ce2), b_ce2,
              w1, b1, w2, b2]

    packed = base_expert_alt_forward(x_flat, pool_mat, spd_p, cmd_p, params)
    packed = packed[:B]
    alpha = packed[:, 0:1]
    mean = packed[:, 1:3]
    std = packed[:, 3:5]
    pred_speed = packed[:, 5:6]
    jax.block_until_ready((alpha, mean, std, pred_speed))

    # ---- pure-JAX f32 reference (un-fused, mirrors the PyTorch module order) --
    relu = jax.nn.relu
    h_r = relu(x @ w_patch + b_patch)                       # (B, nP, Dh)
    img_r = h_r.mean(axis=1) @ w_proj + b_proj              # backbone stand-in
    spd_r = relu(speed @ w_se1 + b_se1) @ w_se2 + b_se2
    cmd_r = relu(command @ w_ce1 + b_ce1) @ w_ce2 + b_ce2
    feat_r = jnp.concatenate([img_r, spd_r, cmd_r], axis=-1)
    pred_speed_r = relu(feat_r @ w_sp1 + b_sp1) @ w_sp2 + b_sp2
    act_r = relu(feat_r @ w_af1 + b_af1) @ w_af2 + b_af2
    ap_r = act_r @ w_ap + b_ap
    mean_r, std_raw_r = ap_r[:, :2], ap_r[:, 2:]
    std_r = jax.nn.elu(std_raw_r) + 1.0
    alpha_r = relu(feat_r @ w_al1 + b_al1) @ w_al2 + b_al2

    assert alpha.shape == (B, 1) and mean.shape == (B, 2)
    assert std.shape == (B, 2) and pred_speed.shape == (B, 1)
    got = jnp.concatenate([alpha, mean, std, pred_speed], -1)
    ref = jnp.concatenate([alpha_r, mean_r, std_r, pred_speed_r], -1)
    assert bool(jnp.all(jnp.isfinite(got)))
    assert bool(jnp.all(std > 0.0))                          # elu(x) + 1 > 0
    assert bool(jnp.allclose(got, ref, rtol=1e-1, atol=5e-2)), (got, ref)

    print("KERNEL_OK")
</pallas_src>

<mosaic_0001>
module attributes {stable_mosaic.version = 11 : i64} {
  func.func @fused_kernel(%arg0: i32, %arg1: memref<128x64xf32, #tpu.memory_space<vmem>>, %arg2: memref<8x128xbf16, #tpu.memory_space<vmem>>, %arg3: memref<8x128xf32, #tpu.memory_space<vmem>>, %arg4: memref<8x128xf32, #tpu.memory_space<vmem>>, %arg5: memref<64x64xbf16, #tpu.memory_space<vmem>>, %arg6: memref<1x64xf32, #tpu.memory_space<vmem>>, %arg7: memref<64x1280xbf16, #tpu.memory_space<vmem>>, %arg8: memref<1x1280xf32, #tpu.memory_space<vmem>>, %arg9: memref<128x128xbf16, #tpu.memory_space<vmem>>, %arg10: memref<1x128xf32, #tpu.memory_space<vmem>>, %arg11: memref<128x128xbf16, #tpu.memory_space<vmem>>, %arg12: memref<1x128xf32, #tpu.memory_space<vmem>>, %arg13: memref<128x128xbf16, #tpu.memory_space<vmem>>, %arg14: memref<1x128xf32, #tpu.memory_space<vmem>>, %arg15: memref<128x128xbf16, #tpu.memory_space<vmem>>, %arg16: memref<1x128xf32, #tpu.memory_space<vmem>>, %arg17: memref<1536x256xbf16, #tpu.memory_space<vmem>>, %arg18: memref<1x256xf32, #tpu.memory_space<vmem>>, %arg19: memref<256x128xbf16, #tpu.memory_space<vmem>>, %arg20: memref<1x128xf32, #tpu.memory_space<vmem>>, %arg21: memref<8x128xf32, #tpu.memory_space<vmem>>, %arg22: memref<8x1536xbf16, #tpu.memory_space<vmem>>, %arg23: memref<8x128xf32, #tpu.memory_space<vmem>>) attributes {dimension_semantics = [#tpu.dimension_semantics<arbitrary>], iteration_bounds = array<i64: 5>, scalar_prefetch = 0 : i64, scratch_operands = 2 : i64, tpu.core_type = #tpu.core_type<tc>, window_params = [{pipeline_mode = #tpu.pipeline_mode<synchronous>, transform_indices = @transform_0, window_bounds = array<i64: 128, 64>}, {pipeline_mode = #tpu.pipeline_mode<synchronous>, transform_indices = @transform_1, window_bounds = array<i64: 8, 128>}, {pipeline_mode = #tpu.pipeline_mode<synchronous>, transform_indices = @transform_2, window_bounds = array<i64: 8, 128>}, {pipeline_mode = #tpu.pipeline_mode<synchronous>, transform_indices = @transform_3, window_bounds = array<i64: 8, 128>}, {pipeline_mode = #tpu.pipeline_mode<synchronous>, transform_indices = @transform_4, window_bounds = array<i64: 64, 64>}, {pipeline_mode = #tpu.pipeline_mode<synchronous>, transform_indices = @transform_5, window_bounds = array<i64: 1, 64>}, {pipeline_mode = #tpu.pipeline_mode<synchronous>, transform_indices = @transform_6, window_bounds = array<i64: 64, 1280>}, {pipeline_mode = #tpu.pipeline_mode<synchronous>, transform_indices = @transform_7, window_bounds = array<i64: 1, 1280>}, {pipeline_mode = #tpu.pipeline_mode<synchronous>, transform_indices = @transform_8, window_bounds = array<i64: 128, 128>}, {pipeline_mode = #tpu.pipeline_mode<synchronous>, transform_indices = @transform_9, window_bounds = array<i64: 1, 128>}, {pipeline_mode = #tpu.pipeline_mode<synchronous>, transform_indices = @transform_10, window_bounds = array<i64: 128, 128>}, {pipeline_mode = #tpu.pipeline_mode<synchronous>, transform_indices = @transform_11, window_bounds = array<i64: 1, 128>}, {pipeline_mode = #tpu.pipeline_mode<synchronous>, transform_indices = @transform_12, window_bounds = array<i64: 128, 128>}, {pipeline_mode = #tpu.pipeline_mode<synchronous>, transform_indices = @transform_13, window_bounds = array<i64: 1, 128>}, {pipeline_mode = #tpu.pipeline_mode<synchronous>, transform_indices = @transform_14, window_bounds = array<i64: 128, 128>}, {pipeline_mode = #tpu.pipeline_mode<synchronous>, transform_indices = @transform_15, window_bounds = array<i64: 1, 128>}, {transform_indices = @transform_16, window_bounds = array<i64: 1536, 256>}, {transform_indices = @transform_17, window_bounds = array<i64: 1, 256>}, {transform_indices = @transform_18, window_bounds = array<i64: 256, 128>}, {pipeline_mode = #tpu.pipeline_mode<synchronous>, transform_indices = @transform_19, window_bounds = array<i64: 1, 128>}, {pipeline_mode = #tpu.pipeline_mode<synchronous>, transform_indices = @transform_20, window_bounds = array<i64: 8, 128>}]} {
    %c0_i32 = arith.constant 0 : i32
    %0 = arith.cmpi eq, %arg0, %c0_i32 : i32
    %1 = arith.extui %0 : i1 to i32
    %c0_i32_0 = arith.constant 0 : i32
    %2 = arith.cmpi ne, %1, %c0_i32_0 : i32
    scf.if %2 {
      %c0_15 = arith.constant 0 : index
      %c0_16 = arith.constant 0 : index
      %20 = vector.load %arg1[%c0_15, %c0_16] : memref<128x64xf32, #tpu.memory_space<vmem>>, vector<128x64xf32>
      %21 = arith.truncf %20 : vector<128x64xf32> to vector<128x64xbf16>
      %c0_17 = arith.constant 0 : index
      %c0_18 = arith.constant 0 : index
      %22 = vector.load %arg5[%c0_17, %c0_18] : memref<64x64xbf16, #tpu.memory_space<vmem>>, vector<64x64xbf16>
      %cst_19 = arith.constant dense<0.000000e+00> : vector<128x64xf32>
      %23 = tpu.matmul %21, %22, %cst_19 {dimension_numbers = #tpu.dot_dimension_numbers<[1], [0], [0], [1], [0, 0, 1, 1], [], []>} : vector<128x64xbf16>, vector<64x64xbf16>, vector<128x64xf32> -> vector<128x64xf32>
      %c0_20 = arith.constant 0 : index
      %c0_21 = arith.constant 0 : index
      %24 = vector.load %arg6[%c0_20, %c0_21] : memref<1x64xf32, #tpu.memory_space<vmem>>, vector<1x64xf32>
      %25 = vector.broadcast %24 : vector<1x64xf32> to vector<128x64xf32>
      %26 = arith.addf %23, %25 : vector<128x64xf32>
      %cst_22 = arith.constant 0.000000e+00 : f32
      %27 = vector.broadcast %cst_22 : f32 to vector<128x64xf32>
      %28 = arith.maximumf %26, %27 : vector<128x64xf32>
      %c0_23 = arith.constant 0 : index
      %c0_24 = arith.constant 0 : index
      %29 = vector.load %arg2[%c0_23, %c0_24] : memref<8x128xbf16, #tpu.memory_space<vmem>>, vector<8x128xbf16>
      %30 = arith.truncf %28 : vector<128x64xf32> to vector<128x64xbf16>
      %cst_25 = arith.constant dense<0.000000e+00> : vector<8x64xf32>
      %31 = tpu.matmul %29, %30, %cst_25 {dimension_numbers = #tpu.dot_dimension_numbers<[1], [0], [0], [1], [0, 0, 1, 1], [], []>} : vector<8x128xbf16>, vector<128x64xbf16>, vector<8x64xf32> -> vector<8x64xf32>
      %32 = arith.truncf %31 : vector<8x64xf32> to vector<8x64xbf16>
      %c0_26 = arith.constant 0 : index
      %c0_27 = arith.constant 0 : index
      %33 = vector.load %arg7[%c0_26, %c0_27] : memref<64x1280xbf16, #tpu.memory_space<vmem>>, vector<64x1280xbf16>
      %cst_28 = arith.constant dense<0.000000e+00> : vector<8x1280xf32>
      %34 = tpu.matmul %32, %33, %cst_28 {dimension_numbers = #tpu.dot_dimension_numbers<[1], [0], [0], [1], [0, 0, 1, 1], [], []>} : vector<8x64xbf16>, vector<64x1280xbf16>, vector<8x1280xf32> -> vector<8x1280xf32>
      %c0_29 = arith.constant 0 : index
      %c0_30 = arith.constant 0 : index
      %35 = vector.load %arg8[%c0_29, %c0_30] : memref<1x1280xf32, #tpu.memory_space<vmem>>, vector<1x1280xf32>
      %36 = vector.broadcast %35 : vector<1x1280xf32> to vector<8x1280xf32>
      %37 = arith.addf %34, %36 : vector<8x1280xf32>
      %c0_31 = arith.constant 0 : index
      %c0_32 = arith.constant 0 : index
      %38 = vector.load %arg3[%c0_31, %c0_32] : memref<8x128xf32, #tpu.memory_space<vmem>>, vector<8x128xf32>
      %39 = arith.truncf %38 : vector<8x128xf32> to vector<8x128xbf16>
      %c0_33 = arith.constant 0 : index
      %c0_34 = arith.constant 0 : index
      %40 = vector.load %arg9[%c0_33, %c0_34] : memref<128x128xbf16, #tpu.memory_space<vmem>>, vector<128x128xbf16>
      %cst_35 = arith.constant dense<0.000000e+00> : vector<8x128xf32>
      %41 = tpu.matmul %39, %40, %cst_35 {dimension_numbers = #tpu.dot_dimension_numbers<[1], [0], [0], [1], [0, 0, 1, 1], [], []>} : vector<8x128xbf16>, vector<128x128xbf16>, vector<8x128xf32> -> vector<8x128xf32>
      %c0_36 = arith.constant 0 : index
      %c0_37 = arith.constant 0 : index
      %42 = vector.load %arg10[%c0_36, %c0_37] : memref<1x128xf32, #tpu.memory_space<vmem>>, vector<1x128xf32>
      %43 = vector.broadcast %42 : vector<1x128xf32> to vector<8x128xf32>
      %44 = arith.addf %41, %43 : vector<8x128xf32>
      %cst_38 = arith.constant 0.000000e+00 : f32
      %45 = vector.broadcast %cst_38 : f32 to vector<8x128xf32>
      %46 = arith.maximumf %44, %45 : vector<8x128xf32>
      %47 = arith.truncf %46 : vector<8x128xf32> to vector<8x128xbf16>
      %c0_39 = arith.constant 0 : index
      %c0_40 = arith.constant 0 : index
      %48 = vector.load %arg11[%c0_39, %c0_40] : memref<128x128xbf16, #tpu.memory_space<vmem>>, vector<128x128xbf16>
      %cst_41 = arith.constant dense<0.000000e+00> : vector<8x128xf32>
      %49 = tpu.matmul %47, %48, %cst_41 {dimension_numbers = #tpu.dot_dimension_numbers<[1], [0], [0], [1], [0, 0, 1, 1], [], []>} : vector<8x128xbf16>, vector<128x128xbf16>, vector<8x128xf32> -> vector<8x128xf32>
      %c0_42 = arith.constant 0 : index
      %c0_43 = arith.constant 0 : index
      %50 = vector.load %arg12[%c0_42, %c0_43] : memref<1x128xf32, #tpu.memory_space<vmem>>, vector<1x128xf32>
      %51 = vector.broadcast %50 : vector<1x128xf32> to vector<8x128xf32>
      %52 = arith.addf %49, %51 : vector<8x128xf32>
      %c0_44 = arith.constant 0 : index
      %c0_45 = arith.constant 0 : index
      %53 = vector.load %arg4[%c0_44, %c0_45] : memref<8x128xf32, #tpu.memory_space<vmem>>, vector<8x128xf32>
      %54 = arith.truncf %53 : vector<8x128xf32> to vector<8x128xbf16>
      %c0_46 = arith.constant 0 : index
      %c0_47 = arith.constant 0 : index
      %55 = vector.load %arg13[%c0_46, %c0_47] : memref<128x128xbf16, #tpu.memory_space<vmem>>, vector<128x128xbf16>
      %cst_48 = arith.constant dense<0.000000e+00> : vector<8x128xf32>
      %56 = tpu.matmul %54, %55, %cst_48 {dimension_numbers = #tpu.dot_dimension_numbers<[1], [0], [0], [1], [0, 0, 1, 1], [], []>} : vector<8x128xbf16>, vector<128x128xbf16>, vector<8x128xf32> -> vector<8x128xf32>
      %c0_49 = arith.constant 0 : index
      %c0_50 = arith.constant 0 : index
      %57 = vector.load %arg14[%c0_49, %c0_50] : memref<1x128xf32, #tpu.memory_space<vmem>>, vector<1x128xf32>
      %58 = vector.broadcast %57 : vector<1x128xf32> to vector<8x128xf32>
      %59 = arith.addf %56, %58 : vector<8x128xf32>
      %cst_51 = arith.constant 0.000000e+00 : f32
      %60 = vector.broadcast %cst_51 : f32 to vector<8x128xf32>
      %61 = arith.maximumf %59, %60 : vector<8x128xf32>
      %62 = arith.truncf %61 : vector<8x128xf32> to vector<8x128xbf16>
      %c0_52 = arith.constant 0 : index
      %c0_53 = arith.constant 0 : index
      %63 = vector.load %arg15[%c0_52, %c0_53] : memref<128x128xbf16, #tpu.memory_space<vmem>>, vector<128x128xbf16>
      %cst_54 = arith.constant dense<0.000000e+00> : vector<8x128xf32>
      %64 = tpu.matmul %62, %63, %cst_54 {dimension_numbers = #tpu.dot_dimension_numbers<[1], [0], [0], [1], [0, 0, 1, 1], [], []>} : vector<8x128xbf16>, vector<128x128xbf16>, vector<8x128xf32> -> vector<8x128xf32>
      %c0_55 = arith.constant 0 : index
      %c0_56 = arith.constant 0 : index
      %65 = vector.load %arg16[%c0_55, %c0_56] : memref<1x128xf32, #tpu.memory_space<vmem>>, vector<1x128xf32>
      %66 = vector.broadcast %65 : vector<1x128xf32> to vector<8x128xf32>
      %67 = arith.addf %64, %66 : vector<8x128xf32>
      %68 = arith.truncf %37 : vector<8x1280xf32> to vector<8x1280xbf16>
      %c0_57 = arith.constant 0 : index
      %c0_58 = arith.constant 0 : index
      %69 = vector.load %arg22[%c0_57, %c0_58] : memref<8x1536xbf16, #tpu.memory_space<vmem>>, vector<8x1280xbf16>
      tpu.vector_store %arg22[%c0_57, %c0_58], %68 {strides = array<i32>} : memref<8x1536xbf16, #tpu.memory_space<vmem>>, vector<8x1280xbf16>,
      %70 = arith.truncf %52 : vector<8x128xf32> to vector<8x128xbf16>
      %c0_59 = arith.constant 0 : index
      %c1280 = arith.constant 1280 : index
      %71 = vector.load %arg22[%c0_59, %c1280] : memref<8x1536xbf16, #tpu.memory_space<vmem>>, vector<8x128xbf16>
      tpu.vector_store %arg22[%c0_59, %c1280], %70 {strides = array<i32>} : memref<8x1536xbf16, #tpu.memory_space<vmem>>, vector<8x128xbf16>,
      %72 = arith.truncf %67 : vector<8x128xf32> to vector<8x128xbf16>
      %c0_60 = arith.constant 0 : index
      %c1408 = arith.constant 1408 : index
      %73 = vector.load %arg22[%c0_60, %c1408] : memref<8x1536xbf16, #tpu.memory_space<vmem>>, vector<8x128xbf16>
      tpu.vector_store %arg22[%c0_60, %c1408], %72 {strides = array<i32>} : memref<8x1536xbf16, #tpu.memory_space<vmem>>, vector<8x128xbf16>,
      %cst_61 = arith.constant 0.000000e+00 : f32
      %74 = vector.broadcast %cst_61 : f32 to vector<8x128xf32>
      %c0_62 = arith.constant 0 : index
      %c0_63 = arith.constant 0 : index
      %75 = vector.load %arg23[%c0_62, %c0_63] : memref<8x128xf32, #tpu.memory_space<vmem>>, vector<8x128xf32>
      tpu.vector_store %arg23[%c0_62, %c0_63], %74 {strides = array<i32>} : memref<8x128xf32, #tpu.memory_space<vmem>>, vector<8x128xf32>,
    } else {
    }
    %c0 = arith.constant 0 : index
    %c0_1 = arith.constant 0 : index
    %3 = vector.load %arg22[%c0, %c0_1] : memref<8x1536xbf16, #tpu.memory_space<vmem>>, vector<8x1536xbf16>
    %c0_2 = arith.constant 0 : index
    %c0_3 = arith.constant 0 : index
    %4 = vector.load %arg17[%c0_2, %c0_3] : memref<1536x256xbf16, #tpu.memory_space<vmem>>, vector<1536x256xbf16>
    %cst = arith.constant dense<0.000000e+00> : vector<8x256xf32>
    %5 = tpu.matmul %3, %4, %cst {dimension_numbers = #tpu.dot_dimension_numbers<[1], [0], [0], [1], [0, 0, 1, 1], [], []>} : vector<8x1536xbf16>, vector<1536x256xbf16>, vector<8x256xf32> -> vector<8x256xf32>
    %c0_4 = arith.constant 0 : index
    %c0_5 = arith.constant 0 : index
    %6 = vector.load %arg18[%c0_4, %c0_5] : memref<1x256xf32, #tpu.memory_space<vmem>>, vector<1x256xf32>
    %7 = vector.broadcast %6 : vector<1x256xf32> to vector<8x256xf32>
    %8 = arith.addf %5, %7 : vector<8x256xf32>
    %cst_6 = arith.constant 0.000000e+00 : f32
    %9 = vector.broadcast %cst_6 : f32 to vector<8x256xf32>
    %10 = arith.maximumf %8, %9 : vector<8x256xf32>
    %c0_7 = arith.constant 0 : index
    %c0_8 = arith.constant 0 : index
    %11 = vector.load %arg23[%c0_7, %c0_8] : memref<8x128xf32, #tpu.memory_space<vmem>>, vector<8x128xf32>
    %12 = arith.truncf %10 : vector<8x256xf32> to vector<8x256xbf16>
    %c0_9 = arith.constant 0 : index
    %c0_10 = arith.constant 0 : index
    %13 = vector.load %arg19[%c0_9, %c0_10] : memref<256x128xbf16, #tpu.memory_space<vmem>>, vector<256x128xbf16>
    %cst_11 = arith.constant dense<0.000000e+00> : vector<8x128xf32>
    %14 = tpu.matmul %12, %13, %cst_11 {dimension_numbers = #tpu.dot_dimension_numbers<[1], [0], [0], [1], [0, 0, 1, 1], [], []>} : vector<8x256xbf16>, vector<256x128xbf16>, vector<8x128xf32> -> vector<8x128xf32>
    %15 = arith.addf %11, %14 : vector<8x128xf32>
    %c0_12 = arith.constant 0 : index
    %c0_13 = arith.constant 0 : index
    %16 = vector.load %arg23[%c0_12, %c0_13] : memref<8x128xf32, #tpu.memory_space<vmem>>, vector<8x128xf32>
    tpu.vector_store %arg23[%c0_12, %c0_13], %15 {strides = array<i32>} : memref<8x128xf32, #tpu.memory_space<vmem>>, vector<8x128xf32>,
    %c4_i32 = arith.constant 4 : i32
    %17 = arith.cmpi eq, %arg0, %c4_i32 : i32
    %18 = arith.extui %17 : i1 to i32
    %c0_i32_14 = arith.constant 0 : i32
    %19 = arith.cmpi ne, %18, %c0_i32_14 : i32
    scf.if %19 {
      %c0_15 = arith.constant 0 : index
      %c0_16 = arith.constant 0 : index
      %20 = vector.load %arg23[%c0_15, %c0_16] : memref<8x128xf32, #tpu.memory_space<vmem>>, vector<8x128xf32>
      %c0_17 = arith.constant 0 : index
      %c0_18 = arith.constant 0 : index
      %21 = vector.load %arg20[%c0_17, %c0_18] : memref<1x128xf32, #tpu.memory_space<vmem>>, vector<1x128xf32>
      %22 = vector.broadcast %21 : vector<1x128xf32> to vector<8x128xf32>
      %23 = arith.addf %20, %22 : vector<8x128xf32>
      %24 = tpu.iota {dimensions = array<i32: 1>} : vector<8x128xi32>
      %cst_19 = arith.constant 0.000000e+00 : f32
      %25 = vector.broadcast %cst_19 : f32 to vector<8x128xf32>
      %26 = arith.cmpf ogt, %23, %25 : vector<8x128xf32>
      %cst_20 = arith.constant 1.000000e+00 : f32
      %27 = vector.broadcast %cst_20 : f32 to vector<8x128xf32>
      %28 = arith.addf %23, %27 : vector<8x128xf32>
      %cst_21 = arith.constant 0.000000e+00 : f32
      %29 = vector.broadcast %cst_21 : f32 to vector<8x128xf32>
      %30 = arith.minimumf %23, %29 : vector<8x128xf32>
      %31 = math.exp %30 : vector<8x128xf32>
      %32 = arith.select %26, %28, %31 : vector<8x128xi1>, vector<8x128xf32>
      %c3_i32 = arith.constant 3 : i32
      %33 = vector.broadcast %c3_i32 : i32 to vector<8x128xi32>
      %34 = arith.cmpi sge, %24, %33 : vector<8x128xi32>
      %c5_i32 = arith.constant 5 : i32
      %35 = vector.broadcast %c5_i32 : i32 to vector<8x128xi32>
      %36 = arith.cmpi slt, %24, %35 : vector<8x128xi32>
      %37 = arith.andi %34, %36 : vector<8x128xi1>
      %38 = arith.select %37, %32, %23 : vector<8x128xi1>, vector<8x128xf32>
      %c0_22 = arith.constant 0 : index
      %c0_23 = arith.constant 0 : index
      %39 = vector.load %arg21[%c0_22, %c0_23] : memref<8x128xf32, #tpu.memory_space<vmem>>, vector<8x128xf32>
      tpu.vector_store %arg21[%c0_22, %c0_23], %38 {strides = array<i32>} : memref<8x128xf32, #tpu.memory_space<vmem>>, vector<8x128xf32>,
    } else {
    }
    return
  }
  func.func @transform_0(%arg0: i32) -> (i32, i32) {
    %c0_i32 = arith.constant 0 : i32
    %c0_i32_0 = arith.constant 0 : i32
    %c0_i32_1 = arith.constant 0 : i32
    return %c0_i32, %c0_i32_0 : i32, i32
  }
  func.func @transform_1(%arg0: i32) -> (i32, i32) {
    %c0_i32 = arith.constant 0 : i32
    %c0_i32_0 = arith.constant 0 : i32
    %c0_i32_1 = arith.constant 0 : i32
    return %c0_i32, %c0_i32_0 : i32, i32
  }
  func.func @transform_2(%arg0: i32) -> (i32, i32) {
    %c0_i32 = arith.constant 0 : i32
    %c0_i32_0 = arith.constant 0 : i32
    %c0_i32_1 = arith.constant 0 : i32
    return %c0_i32, %c0_i32_0 : i32, i32
  }
  func.func @transform_3(%arg0: i32) -> (i32, i32) {
    %c0_i32 = arith.constant 0 : i32
    %c0_i32_0 = arith.constant 0 : i32
    %c0_i32_1 = arith.constant 0 : i32
    return %c0_i32, %c0_i32_0 : i32, i32
  }
  func.func @transform_4(%arg0: i32) -> (i32, i32) {
    %c0_i32 = arith.constant 0 : i32
    %c0_i32_0 = arith.constant 0 : i32
    %c0_i32_1 = arith.constant 0 : i32
    return %c0_i32, %c0_i32_0 : i32, i32
  }
  func.func @transform_5(%arg0: i32) -> (i32, i32) {
    %c0_i32 = arith.constant 0 : i32
    %c0_i32_0 = arith.constant 0 : i32
    %c0_i32_1 = arith.constant 0 : i32
    return %c0_i32, %c0_i32_0 : i32, i32
  }
  func.func @transform_6(%arg0: i32) -> (i32, i32) {
    %c0_i32 = arith.constant 0 : i32
    %c0_i32_0 = arith.constant 0 : i32
    %c0_i32_1 = arith.constant 0 : i32
    return %c0_i32, %c0_i32_0 : i32, i32
  }
  func.func @transform_7(%arg0: i32) -> (i32, i32) {
    %c0_i32 = arith.constant 0 : i32
    %c0_i32_0 = arith.constant 0 : i32
    %c0_i32_1 = arith.constant 0 : i32
    return %c0_i32, %c0_i32_0 : i32, i32
  }
  func.func @transform_8(%arg0: i32) -> (i32, i32) {
    %c0_i32 = arith.constant 0 : i32
    %c0_i32_0 = arith.constant 0 : i32
    %c0_i32_1 = arith.constant 0 : i32
    return %c0_i32, %c0_i32_0 : i32, i32
  }
  func.func @transform_9(%arg0: i32) -> (i32, i32) {
    %c0_i32 = arith.constant 0 : i32
    %c0_i32_0 = arith.constant 0 : i32
    %c0_i32_1 = arith.constant 0 : i32
    return %c0_i32, %c0_i32_0 : i32, i32
  }
  func.func @transform_10(%arg0: i32) -> (i32, i32) {
    %c0_i32 = arith.constant 0 : i32
    %c0_i32_0 = arith.constant 0 : i32
    %c0_i32_1 = arith.constant 0 : i32
    return %c0_i32, %c0_i32_0 : i32, i32
  }
  func.func @transform_11(%arg0: i32) -> (i32, i32) {
    %c0_i32 = arith.constant 0 : i32
    %c0_i32_0 = arith.constant 0 : i32
    %c0_i32_1 = arith.constant 0 : i32
    return %c0_i32, %c0_i32_0 : i32, i32
  }
  func.func @transform_12(%arg0: i32) -> (i32, i32) {
    %c0_i32 = arith.constant 0 : i32
    %c0_i32_0 = arith.constant 0 : i32
    %c0_i32_1 = arith.constant 0 : i32
    return %c0_i32, %c0_i32_0 : i32, i32
  }
  func.func @transform_13(%arg0: i32) -> (i32, i32) {
    %c0_i32 = arith.constant 0 : i32
    %c0_i32_0 = arith.constant 0 : i32
    %c0_i32_1 = arith.constant 0 : i32
    return %c0_i32, %c0_i32_0 : i32, i32
  }
  func.func @transform_14(%arg0: i32) -> (i32, i32) {
    %c0_i32 = arith.constant 0 : i32
    %c0_i32_0 = arith.constant 0 : i32
    %c0_i32_1 = arith.constant 0 : i32
    return %c0_i32, %c0_i32_0 : i32, i32
  }
  func.func @transform_15(%arg0: i32) -> (i32, i32) {
    %c0_i32 = arith.constant 0 : i32
    %c0_i32_0 = arith.constant 0 : i32
    %c0_i32_1 = arith.constant 0 : i32
    return %c0_i32, %c0_i32_0 : i32, i32
  }
  func.func @transform_16(%arg0: i32) -> (i32, i32) {
    %c0_i32 = arith.constant 0 : i32
    %c0_i32_0 = arith.constant 0 : i32
    return %c0_i32, %arg0 : i32, i32
  }
  func.func @transform_17(%arg0: i32) -> (i32, i32) {
    %c0_i32 = arith.constant 0 : i32
    %c0_i32_0 = arith.constant 0 : i32
    return %c0_i32, %arg0 : i32, i32
  }
  func.func @transform_18(%arg0: i32) -> (i32, i32) {
    %c0_i32 = arith.constant 0 : i32
    %c0_i32_0 = arith.constant 0 : i32
    return %arg0, %c0_i32 : i32, i32
  }
  func.func @transform_19(%arg0: i32) -> (i32, i32) {
    %c0_i32 = arith.constant 0 : i32
    %c0_i32_0 = arith.constant 0 : i32
    %c0_i32_1 = arith.constant 0 : i32
    return %c0_i32, %c0_i32_0 : i32, i32
  }
  func.func @transform_20(%arg0: i32) -> (i32, i32) {
    %c0_i32 = arith.constant 0 : i32
    %c0_i32_0 = arith.constant 0 : i32
    %c0_i32_1 = arith.constant 0 : i32
    return %c0_i32, %c0_i32_0 : i32, i32
  }
}

</mosaic_0001>

<bundles_post_ra>
// kernel: tpu_custom_call.1
= control target key start
LH: loop header
LB: loop body
LE: loop exit
PB: predicated region body
PF: predicated region fallthrough
CT: control target
= control target key end

     0   :  { %s6814_s0 = inlined_call_operand.vmem [shape: f32[128,64], index: 0, kind: input, shape index: {}]   ;;  %s6815_s1 = inlined_call_operand.hbm [shape: bf16[8,128], index: 1, kind: input, shape index: {}]   ;;  %s6816_s2 = inlined_call_operand.hbm [shape: f32[8,128], index: 2, kind: input, shape index: {}]   ;;  %s6817_s3 = inlined_call_operand.hbm [shape: f32[8,128], index: 3, kind: input, shape index: {}]   ;;  %s6818_s4 = inlined_call_operand.hbm [shape: bf16[64,64], index: 4, kind: input, shape index: {}]   ;;  %s6819_s5 = inlined_call_operand.hbm [shape: f32[1,64], index: 5, kind: input, shape index: {}]   ;;  %s6820_s6 = inlined_call_operand.hbm [shape: bf16[64,1280], index: 6, kind: input, shape index: {}]   ;;  %s6821_s7 = inlined_call_operand.hbm [shape: f32[1,1280], index: 7, kind: input, shape index: {}]   ;;  %s6822_s8 = inlined_call_operand.hbm [shape: bf16[128,128], index: 8, kind: input, shape index: {}]   ;;  %s6823_s9 = inlined_call_operand.hbm [shape: f32[1,128], index: 9, kind: input, shape index: {}]   ;;  %s6824_s10 = inlined_call_operand.hbm [shape: bf16[128,128], index: 10, kind: input, shape index: {}]   ;;  %s6825_s11 = inlined_call_operand.hbm [shape: f32[1,128], index: 11, kind: input, shape index: {}]   ;;  %s6826_s12 = inlined_call_operand.hbm [shape: bf16[128,128], index: 12, kind: input, shape index: {}]   ;;  %s6827_s13 = inlined_call_operand.hbm [shape: f32[1,128], index: 13, kind: input, shape index: {}]   ;;  %s6828_s14 = inlined_call_operand.hbm [shape: bf16[128,128], index: 14, kind: input, shape index: {}]   ;;  %s6829_s15 = inlined_call_operand.hbm [shape: f32[1,128], index: 15, kind: input, shape index: {}]   ;;  %s6830_s16 = inlined_call_operand.hbm [shape: bf16[1536,1280], index: 16, kind: input, shape index: {}]   ;;  %s6831_s17 = inlined_call_operand.hbm [shape: f32[1,1280], index: 17, kind: input, shape index: {}]   ;;  %s6832_s18 = inlined_call_operand.hbm [shape: bf16[1280,128], index: 18, kind: input, shape index: {}]   ;;  %s6833_s19 = inlined_call_operand.hbm [shape: f32[1,128], index: 19, kind: input, shape index: {}]   ;;  %s6834_s20 = inlined_call_operand.hbm [shape: f32[8,128], index: 20, kind: output, shape index: {}]  }
   0x1   :  { %6856 = sst [smem:[#allocation50_spill]] %s6814_s0 }
   0x2   :  { %6857 = sst [smem:[#allocation51_spill]] %s6815_s1 }
   0x3   :  { %6858 = sst [smem:[#allocation52_spill]] %s6816_s2 }
   0x4   :  { %6859 = sst [smem:[#allocation53_spill]] %s6817_s3 }
   0x5   :  { %6860 = sst [smem:[#allocation54_spill]] %s6818_s4 }
   0x6   :  { %6861 = sst [smem:[#allocation55_spill]] %s6819_s5 }
   0x7   :  { %6862 = sst [smem:[#allocation56_spill]] %s6820_s6 }
   0x8   :  { %6863 = sst [smem:[#allocation57_spill]] %s6822_s8 }
   0x9   :  { %6864 = sst [smem:[#allocation58_spill]] %s6824_s10 }
   0xa   :  { %6865 = sst [smem:[#allocation59_spill]] %s6826_s12 }
   0xb   :  { %6866 = sst [smem:[#allocation60_spill]] %s6828_s14 }
   0xc   :  { %6867 = sst [smem:[#allocation61_spill]] %s6830_s16 }
   0xd   :  { %6868 = sst [smem:[#allocation62_spill]] %s6831_s17 }
   0xe   :  { %6869 = sst [smem:[#allocation63_spill]] %s6832_s18 }
   0xf   :  { %6870 = sst [smem:[#allocation64_spill]] %s6833_s19 }
  0x10   :  { %6871 = sst [smem:[#allocation65_spill]] %s6834_s20 }
  0x11   :  { %25 = vsyncpa [#allocation5], 0 }
  0x12   :  { %26 = vsyncpa [#allocation8], 0 }
  0x13   :  { %27 = vsyncpa [#allocation11], 0 }
  0x14   :  { %28 = vsyncpa [#allocation14], 0 }
  0x15   :  { %29 = vsyncpa [#allocation17], 0 }
  0x16   :  { %30 = vsyncpa [#allocation20], 0 }
  0x17   :  { %31 = vsyncpa [#allocation23], 0 }
  0x18   :  { %32 = vsyncpa [#allocation26], 0 }
  0x19   :  { %33 = vsyncpa [#allocation29], 0 }
  0x1a   :  { %35 = vsyncpa [#allocation29 + $0x1], 0 }
  0x1b   :  { %36 = vsyncpa [#allocation32], 0 }
  0x1c   :  { %38 = vsyncpa [#allocation32 + $0x1], 0 }
  0x1d   :  { %39 = vsyncpa [#allocation6], 0  ;;  %s6068_s1 = smov 0   ;;  %s6070_s22 = smov 0  }
  0x1e   :  { %s6072_s23 = smov 0   ;;  %s6074_s24 = smov 0  }
  0x1f LB: > { %6872 = sst [smem:[#allocation47_spill]] %s5928_s23  ;;  %s5934_s2 = smov [#allocation7]   ;;  %s5932_s24 = sphi %s6074_s24, %s6932_s24   ;;  %s5928_s23 = sphi %s6072_s23, %s6929_s23   ;;  %s5924_s22 = sphi %s6070_s22, %s6931_s22   ;;  %s5920_s1 = sphi %s6068_s1, %s6930_s1  }
  0x20   : > { %s533_s25 = sshll.u32 %s5934_s2, 4  ;;  %s6089_s3 = sadd.s32 4294967295, %s5932_s24   ;;  %s534_s25 = int_to_ptr.vmem [resolvable:$true] %s533_s25 }
  0x21   : > { %p4100_p0 = scmp.ge.s32.totalorder %s5932_s24, 1  ;;  %p6844_p1 = scmp.eq.s32.totalorder %s6089_s3, 0 }
  0x22   : > { %p506_p2 = scmp.lt.s32.totalorder %s5932_s24, 6  ;;  %s5935_s27 = smov [#allocation10]  }
  0x23   : > { %s554_s28 = sshll.u32 %s5935_s27, 4  ;;  %s5936_s29 = smov [#allocation13]   ;;  %s6101_s28 = int_to_ptr.vmem [resolvable:$true] %s554_s28 }
  0x24   : > { %p6095_p4 = pnand %p4100_p0, %p506_p2  ;;  %s578_s30 = sshll.u32 %s5936_s29, 4  ;;  %s6109_s30 = int_to_ptr.vmem [resolvable:$true] %s578_s30 }
  0x25   : > { %s5341_s21 = scalar_lea.vmem %s534_s25, 128  ;;  %p5349_p11 = scmp.lt.s32.totalorder %s534_s25, %s534_s25 }
  0x26   : > { %s6873_s26 = scalar_select %p6095_p4, 1, 0 }
  0x27   : > { %p4764_p5 = pneg %p6095_p4  ;;  %p5342_p8 = scmp.ne.s32.totalorder %s534_s25, %s5341_s21 }
  0x28   : > { %6874 = sst [smem:[#allocation48_spill]] %s6873_s26  ;;  %p5350_p12 = scmp.lt.s32.totalorder %s5341_s21, %s5341_s21 }
  0x29   : > { %p6105_p6 = pnand %p4764_p5, %p6844_p1 }
  0x2a   : > { %p5351_p13 = por %p5350_p12, %p5349_p11 }
  0x2b   : > { %s6875_s4 = scalar_select %p6105_p6, 1, 0 }
  0x2c   : > { %p6113_p7 = pneg %p6105_p6 }
  0x2e   : > { %s6876_s0 = scalar_select %p6113_p7, 1, 0 }
  0x2f   : > { %p5344_p9 = pnand %p5342_p8, %p6113_p7 }
  0x31   : > { %p5345_p10 = pneg %p5344_p9 }
  0x33   : > { %p5352_p0 = pnand %p5351_p13, %p5345_p10 }
  0x35   : > { %5355 = shalt.err (!%p5352_p0)
}
  0x36   : > { %s6877_s29 = sld [smem:[#allocation52_spill]]  ;;  %s5367_s20 = scalar_lea.vmem %s6101_s28, 512 }
  0x37   : > { %p5368_p2 = scmp.ne.s32.totalorder %s6101_s28, %s5367_s20  ;;  %p5375_p9 = scmp.lt.s32.totalorder %s6101_s28, %s6101_s28 }
  0x38   : > { %p5376_p11 = scmp.lt.s32.totalorder %s5367_s20, %s5367_s20 }
  0x39   : > { %p5370_p5 = pnand %p5368_p2, %p6113_p7 }
  0x3a   : > { %p5377_p10 = por %p5376_p11, %p5375_p9 }
  0x3b   : > { %p5371_p8 = pneg %p5370_p5 }
  0x3c   : > { %4770 = dma.hbm_to_vmem [thread:$0]  (!%p6105_p6), %s6877_s29, 128, %s534_s25, [#allocation8]  }
  0x3d   : > { %p5378_p12 = pnand %p5377_p10, %p5371_p8 }
  0x3f   : > { %5381 = shalt.err (!%p5378_p12)
}
  0x40   : > { %s6838_s21 = smov 64   ;;  %s6840_s2 = smov 4  }
  0x41   : > { %s6878_s29 = sld [smem:[#allocation54_spill]]  ;;  %s5393_s20 = scalar_lea.vmem %s6109_s30, 5120 }
  0x42   : > { %p5394_p13 = scmp.ne.s32.totalorder %s6109_s30, %s5393_s20  ;;  %p5401_p5 = scmp.lt.s32.totalorder %s6109_s30, %s6109_s30 }
  0x43   : > { %p5402_p8 = scmp.lt.s32.totalorder %s5393_s20, %s5393_s20 }
  0x44   : > { %p5396_p0 = pnand %p5394_p13, %p6113_p7 }
  0x45   : > { %p5403_p9 = por %p5402_p8, %p5401_p5 }
  0x46   : > { %p5397_p2 = pneg %p5396_p0 }
  0x47   : > { %4776 = dma.hbm_to_vmem [thread:$0]  (!%p6105_p6), %s6878_s29, 512, %s6101_s28, [#allocation11], %s6838_s21, %s6838_s21, %s6840_s2  }
  0x48   : > { %p5404_p11 = pnand %p5403_p9, %p5397_p2 }
  0x4a   : > { %5407 = shalt.err (!%p5404_p11)
}
  0x4b   : > { %s6843_s26 = smov 640   ;;  %s5940_s18 = smov 40  }
  0x4c   : > { %s6879_s6 = sld [smem:[#allocation56_spill]]  ;;  %s5941_s27 = smov [#allocation16]  }
  0x4d   : > { %s602_s29 = sshll.u32 %s5941_s27, 4  ;;  %s5942_s21 = smov [#allocation19]   ;;  %s603_s29 = int_to_ptr.vmem [resolvable:$true] %s602_s29 }
  0x4e   : > { %s626_s20 = sshll.u32 %s5942_s21, 4  ;;  %s5419_s2 = scalar_lea.vmem %s603_s29, 1024  ;;  %s627_s20 = int_to_ptr.vmem [resolvable:$true] %s626_s20 }
  0x4f   : > { %p5420_p10 = scmp.ne.s32.totalorder %s603_s29, %s5419_s2  ;;  %p5427_p0 = scmp.lt.s32.totalorder %s603_s29, %s603_s29 }
  0x50   : > { %p5428_p2 = scmp.lt.s32.totalorder %s5419_s2, %s5419_s2 }
  0x51   : > { %p5422_p12 = pnand %p5420_p10, %p6113_p7 }
  0x52   : > { %4782 = dma.hbm_to_vmem [thread:$0]  (!%p6105_p6), %s6879_s6, 5120, %s6109_s30, [#allocation14], %s6843_s26, %s6843_s26, %s5940_s18  }
  0x53   : > { %p5423_p13 = pneg %p5422_p12  ;;  %p5429_p5 = por %p5428_p2, %p5427_p0 }
  0x55   : > { %p5430_p8 = pnand %p5429_p5, %p5423_p13 }
  0x57   : > { %5433 = shalt.err (!%p5430_p8)
}
  0x58   : > { %s6880_s17 = smov 4   ;;  %s6881_s28 = smov 64  }
  0x59   : > { %s6882_s8 = sld [smem:[#allocation57_spill]]  ;;  %s5445_s21 = scalar_lea.vmem %s627_s20, 1024 }
  0x5a   : > { %p5446_p9 = scmp.ne.s32.totalorder %s627_s20, %s5445_s21  ;;  %p5453_p12 = scmp.lt.s32.totalorder %s627_s20, %s627_s20 }
  0x5b   : > { %p5454_p0 = scmp.lt.s32.totalorder %s5445_s21, %s5445_s21 }
  0x5c   : > { %p5448_p11 = pnand %p5446_p9, %p6113_p7 }
  0x5d   : > { %p5455_p13 = por %p5454_p0, %p5453_p12 }
  0x5e   : > { %p5449_p10 = pneg %p5448_p11 }
  0x5f   : > { %4788 = dma.hbm_to_vmem [thread:$0]  (!%p6105_p6), %s6882_s8, 1024, %s603_s29, [#allocation17], %s6881_s28, %s6881_s28, %s6880_s17  }
  0x60   : > { %p5456_p2 = pnand %p5455_p13, %p5449_p10 }
  0x62   : > { %5459 = shalt.err (!%p5456_p2)
}
  0x63   : > { %s6883_s10 = sld [smem:[#allocation58_spill]]  ;;  %s5943_s27 = smov [#allocation22]  }
  0x64   : > { %s650_s29 = sshll.u32 %s5943_s27, 4  ;;  %s5944_s18 = smov [#allocation25]   ;;  %s651_s29 = int_to_ptr.vmem [resolvable:$true] %s650_s29 }
  0x65   : > { %s674_s30 = sshll.u32 %s5944_s18, 4  ;;  %s5471_s26 = scalar_lea.vmem %s651_s29, 1024  ;;  %s675_s30 = int_to_ptr.vmem [resolvable:$true] %s674_s30 }
  0x66   : > { %p5472_p5 = scmp.ne.s32.totalorder %s651_s29, %s5471_s26  ;;  %p5479_p11 = scmp.lt.s32.totalorder %s651_s29, %s651_s29 }
  0x67   : > { %p5480_p10 = scmp.lt.s32.totalorder %s5471_s26, %s5471_s26 }
  0x68   : > { %p5474_p8 = pnand %p5472_p5, %p6113_p7 }
  0x69   : > { %4794 = dma.hbm_to_vmem [thread:$0]  (!%p6105_p6), %s6883_s10, 1024, %s627_s20, [#allocation20], %s6881_s28, %s6881_s28, %s6880_s17  }
  0x6a   : > { %p5475_p9 = pneg %p5474_p8  ;;  %p5481_p12 = por %p5480_p10, %p5479_p11 }
  0x6c   : > { %p5482_p0 = pnand %p5481_p12, %p5475_p9 }
  0x6e   : > { %5485 = shalt.err (!%p5482_p0)
}
  0x6f   : > { %s6884_s12 = sld [smem:[#allocation59_spill]]  ;;  %s5497_s2 = scalar_lea.vmem %s675_s30, 1024 }
  0x70   : > { %p5498_p13 = scmp.ne.s32.totalorder %s675_s30, %s5497_s2  ;;  %p5505_p8 = scmp.lt.s32.totalorder %s675_s30, %s675_s30 }
  0x71   : > { %p5506_p11 = scmp.lt.s32.totalorder %s5497_s2, %s5497_s2 }
  0x72   : > { %p5500_p2 = pnand %p5498_p13, %p6113_p7 }
  0x73   : > { %p5507_p9 = por %p5506_p11, %p5505_p8 }
  0x74   : > { %p5501_p5 = pneg %p5500_p2 }
  0x75   : > { %4800 = dma.hbm_to_vmem [thread:$0]  (!%p6105_p6), %s6884_s12, 1024, %s651_s29, [#allocation23], %s6881_s28, %s6881_s28, %s6880_s17  }
  0x76   : > { %p5508_p10 = pnand %p5507_p9, %p5501_p5 }
  0x78   : > { %5511 = shalt.err (!%p5508_p10)
}
  0x79   : > { %s6885_s14 = sld [smem:[#allocation60_spill]]  ;;  %s5945_s27 = smov [#allocation33]  }
  0x7a   : > { %s699_s29 = sshll.u32 %s5945_s27, 4  ;;  %s700_s29 = int_to_ptr.vmem [resolvable:$true] %s699_s29 }
  0x7b   : > { %s5523_s18 = scalar_lea.vmem %s700_s29, 16  ;;  %s5530_s20 = scalar_lea.vmem %s700_s29, 32 }
  0x7c   : > { %p5524_p12 = scmp.ne.s32.totalorder %s700_s29, %s5523_s18  ;;  %p5531_p2 = scmp.lt.s32.totalorder %s700_s29, %s700_s29 }
  0x7d   : > { %p5532_p5 = scmp.lt.s32.totalorder %s5530_s20, %s5523_s18 }
  0x7e   : > { %p5526_p0 = pnand %p5524_p12, %p6113_p7 }
  0x7f   : > { %4806 = dma.hbm_to_vmem [thread:$0]  (!%p6105_p6), %s6885_s14, 1024, %s675_s30, [#allocation26], %s6881_s28, %s6881_s28, %s6880_s17  }
  0x80   : > { %p5527_p13 = pneg %p5526_p0  ;;  %p5533_p8 = por %p5532_p5, %p5531_p2 }
  0x82   : > { %p5534_p11 = pnand %p5533_p8, %p5527_p13 }
  0x84   : > { %5537 = shalt.err (!%p5534_p11)
}
  0x85   : > { %s6886_s19 = sld [smem:[#allocation64_spill]]  ;;  %s6201_s30 = sadd.s32 1, %s5932_s24  }
  0x86   : > { %s388_s26 = sadd.s32 1, %s5928_s23  ;;  %s385_s25 = ssub.s32 %s5932_s24, %s6201_s30 }
  0x87   : > { %p395_p9 = scmp.ne.s32.totalorder %s5928_s23, %s5924_s22  ;;  %p386_p10 = scmp.eq.s32.totalorder %s385_s25, 0 }
  0x88   : > { %p396_p12 = scmp.eq.s32.totalorder %s5932_s24, 0  ;;  %p401_p0 = scmp.ne.s32.totalorder %s5924_s22, %s5920_s1 }
  0x89   : > { %p4839_p13 = scmp.lt.s32.totalorder %s5932_s24, 5  ;;  %s6223_s20 = sand.u32 1, %s5928_s23  }
  0x8a   : > { %s6213_s27 = scalar_select %p386_p10, %s5928_s23, %s388_s26  }
  0x8b   : > { %4812 = dma.hbm_to_vmem [thread:$0]  (!%p6105_p6), %s6886_s19, 16, %s700_s29, [#allocation32]  }
  0x8c   : > { %6887 = sst [smem:[#allocation49_spill]] %s6213_s27  ;;  %p397_p2 = por %p396_p12, %p395_p9 }
  0x8d   : > { %p6217_p5 = por %p6844_p1, %p401_p0  ;;  %s4688_s21 = smul.u32 1536, %s6223_s20 }
  0x8e   : > { %s4471_s2 = sshll.u32 %s5932_s24, 7  ;;  %p6227_p8 = pnand %p4839_p13, %p397_p2 }
  0x8f   : > { %s6888_s18 = scalar_select %p6217_p5, 1, 0 }
  0x90   : > { %s6889_s25 = scalar_select %p6227_p8, 1, 0 }
  0x91   : > { %s6890_s16 = sld [smem:[#allocation61_spill]]  ;;  %s714_s8 = scalar_lea.vmem [#allocation28], %s4688_s21 }
  0x92   : > { %s721_s29 = sshll.u32 %s714_s8, 4  ;;  %s6891_s10 = sand.u32 1, %s5932_s24   ;;  %s6236_s29 = int_to_ptr.vmem [resolvable:$true] %s721_s29 }
  0x93   : > { %s6240_s12 = scalar_lea.sflag [#allocation29], %s6891_s10  ;;  %p6246_p9 = pneg %p6227_p8 }
  0x95   : > { %s6892_s19 = scalar_select %p6246_p9, 1, 0 }
  0x97   : > { %s6234_s26 = scalar_lea.hbm %s6890_s16, %s4471_s2  ;;  %s5543_s8 = scalar_lea.hbm %s6890_s16, 122880 }
  0x98   : > { %s5538_s14 = scalar_lea.hbm %s6234_s26, 24576  ;;  %p5544_p0 = scmp.lt.s32.totalorder %s6234_s26, %s6890_s16 }
  0x99   : > { %p5539_p11 = scmp.ne.s32.totalorder %s6234_s26, %s5538_s14  ;;  %p5545_p13 = scmp.lt.s32.totalorder %s5543_s8, %s5538_s14 }
  0x9b   : > { %p5541_p10 = pnand %p6246_p9, %p5539_p11  ;;  %p5546_p2 = por %p5545_p13, %p5544_p0 }
  0x9d   : > { %p5542_p12 = pneg %p5541_p10 }
  0x9f   : > { %p5547_p3 = pnand %p5546_p2, %p5542_p12 }
  0xa1   : > { %5550 = shalt.err (!%p5547_p3)
}
  0xa2   : > { %s5551_s10 = scalar_lea.vmem %s6236_s29, 24576  ;;  %s5946_s27 = smov [#allocation28]  }
  0xa3   : > { %p5552_p1 = scmp.ne.s32.totalorder %s6236_s29, %s5551_s10  ;;  %s5556_s6 = sshll.u32 %s5946_s27, 4  ;;  %s5557_s6 = int_to_ptr.vmem [resolvable:$false] %s5556_s6 }
  0xa4   : > { %s5558_s2 = scalar_lea.vmem %s5557_s6, 49152  ;;  %p5559_p5 = scmp.lt.s32.totalorder %s6236_s29, %s5557_s6 }
  0xa5   : > { %p5554_p11 = pnand %p5552_p1, %p6246_p9  ;;  %p5560_p4 = scmp.lt.s32.totalorder %s5558_s2, %s5551_s10 }
  0xa7   : > { %p5555_p10 = pneg %p5554_p11  ;;  %p5561_p6 = por %p5560_p4, %p5559_p5 }
  0xa9   : > { %p5562_p7 = pnand %p5561_p6, %p5555_p10 }
  0xab   : > { %5565 = shalt.err (!%p5562_p7)
}
  0xac   : > { %s5947_s14 = smov 128   ;;  %s5948_s8 = smov 8  }
  0xad   : > { %s6893_s21 = smov 640   ;;  %s5949_s1 = smov [#allocation4]  }
  0xae   : > { %4816 = dma.hbm_to_vmem [thread:$0]  (!%p6227_p8), %s6234_s26, 24576, %s6236_s29, %s6240_s12, %s6893_s21, %s5947_s14, %s5948_s8  }
  0xaf   : > { %s522_s16 = sshll.u32 %s5949_s1, 4  ;;  %s5950_s27 = smov [#allocation9]   ;;  %s523_s16 = int_to_ptr.vmem [resolvable:$true] %s522_s16 }
  0xb0   : > { %s544_s23 = sshll.u32 %s5950_s27, 4  ;;  %s5577_s6 = scalar_lea.vmem %s523_s16, 64  ;;  %s545_s23 = int_to_ptr.vmem [resolvable:$true] %s544_s23 }
  0xb1   : > { %p5578_p1 = scmp.ne.s32.totalorder %s523_s16, %s5577_s6  ;;  %p6894_p3 = scmp.ne.s32.totalorder %s6876_s0, 0 }
  0xb2   : > { %p5585_p7 = scmp.lt.s32.totalorder %s523_s16, %s523_s16  ;;  %p5586_p5 = scmp.lt.s32.totalorder %s5577_s6, %s5577_s6 }
  0xb3   : > { %p5580_p4 = pnand %p5578_p1, %p6894_p3 }
  0xb4   : > { %p5587_p12 = por %p5586_p5, %p5585_p7 }
  0xb5   : > { %p5581_p6 = pneg %p5580_p4 }
  0xb7   : > { %p5588_p0 = pnand %p5587_p12, %p5581_p6 }
  0xb9   : > { %5591 = shalt.err (!%p5588_p0)
}
  0xba   : > { %p6895_p13 = scmp.ne.s32.totalorder %s6875_s4, 0  ;;  %s6896_s29 = sld [smem:[#allocation51_spill]] }
  0xbb   : > { %s5603_s26 = scalar_lea.vmem %s545_s23, 128  ;;  %p5611_p1 = scmp.lt.s32.totalorder %s545_s23, %s545_s23 }
  0xbc   : > { %p5604_p2 = scmp.ne.s32.totalorder %s545_s23, %s5603_s26  ;;  %p5612_p4 = scmp.lt.s32.totalorder %s5603_s26, %s5603_s26 }
  0xbe   : > { %p5606_p11 = pnand %p5604_p2, %p6894_p3  ;;  %p5613_p8 = por %p5612_p4, %p5611_p1 }
  0xc0   : > { %4767 = dma.hbm_to_vmem [thread:$0]  (!%p6895_p13), %s6896_s29, 64, %s523_s16, [#allocation5]  }
  0xc1   : > { %p5607_p10 = pneg %p5606_p11 }
  0xc3   : > { %p5614_p9 = pnand %p5613_p8, %p5607_p10 }
  0xc5   : > { %5617 = shalt.err (!%p5614_p9)
}
  0xc6   : > { %s6897_s21 = sld [smem:[#allocation53_spill]]  ;;  %s5951_s1 = smov [#allocation12]  }
  0xc7   : > { %s568_s16 = sshll.u32 %s5951_s1, 4  ;;  %s5952_s27 = smov [#allocation15]   ;;  %s569_s16 = int_to_ptr.vmem [resolvable:$true] %s568_s16 }
  0xc8   : > { %s592_s6 = sshll.u32 %s5952_s27, 4  ;;  %s5629_s10 = scalar_lea.vmem %s569_s16, 16  ;;  %s593_s6 = int_to_ptr.vmem [resolvable:$true] %s592_s6 }
  0xc9   : > { %p5630_p6 = scmp.ne.s32.totalorder %s569_s16, %s5629_s10  ;;  %s5636_s2 = scalar_lea.vmem %s569_s16, 32 }
  0xca   : > { %p5637_p8 = scmp.lt.s32.totalorder %s569_s16, %s569_s16  ;;  %p5638_p9 = scmp.lt.s32.totalorder %s5636_s2, %s5629_s10 }
  0xcb   : > { %p5632_p7 = pnand %p5630_p6, %p6894_p3 }
  0xcc   : > { %4773 = dma.hbm_to_vmem [thread:$0]  (!%p6895_p13), %s6897_s21, 128, %s545_s23, [#allocation8]  }
  0xcd   : > { %p5633_p5 = pneg %p5632_p7  ;;  %p5639_p12 = por %p5638_p9, %p5637_p8 }
  0xcf   : > { %p5640_p0 = pnand %p5639_p12, %p5633_p5 }
  0xd1   : > { %5643 = shalt.err (!%p5640_p0)
}
  0xd2   : > { %s6898_s5 = sld [smem:[#allocation55_spill]]  ;;  %s5655_s26 = scalar_lea.vmem %s593_s6, 160 }
  0xd3   : > { %p5656_p2 = scmp.ne.s32.totalorder %s593_s6, %s5655_s26  ;;  %p5663_p1 = scmp.lt.s32.totalorder %s593_s6, %s593_s6 }
  0xd4   : > { %p5664_p4 = scmp.lt.s32.totalorder %s5655_s26, %s5655_s26 }
  0xd5   : > { %p5658_p11 = pnand %p5656_p2, %p6894_p3 }
  0xd6   : > { %p5665_p6 = por %p5664_p4, %p5663_p1 }
  0xd7   : > { %p5659_p10 = pneg %p5658_p11 }
  0xd8   : > { %4779 = dma.hbm_to_vmem [thread:$0]  (!%p6895_p13), %s6898_s5, 16, %s569_s16, [#allocation11]  }
  0xd9   : > { %p5666_p7 = pnand %p5665_p6, %p5659_p10 }
  0xdb   : > { %5669 = shalt.err (!%p5666_p7)
}
  0xdc   : > { %4785 = dma.hbm_to_vmem [thread:$0]  (!%p6895_p13), %s6821_s7, 160, %s593_s6, [#allocation14]  }
  0xdd   : > { %s5953_s21 = smov [#allocation18]   ;;  %s5954_s16 = smov [#allocation21]  }
  0xde   : > { %s616_s1 = sshll.u32 %s5953_s21, 4  ;;  %s640_s27 = sshll.u32 %s5954_s16, 4  ;;  %s617_s1 = int_to_ptr.vmem [resolvable:$true] %s616_s1  ;;  %s641_s27 = int_to_ptr.vmem [resolvable:$true] %s640_s27 }
  0xdf   : > { %s5681_s10 = scalar_lea.vmem %s617_s1, 16  ;;  %s5688_s2 = scalar_lea.vmem %s617_s1, 32 }
  0xe0   : > { %p5682_p5 = scmp.ne.s32.totalorder %s617_s1, %s5681_s10  ;;  %p5689_p12 = scmp.lt.s32.totalorder %s617_s1, %s617_s1 }
  0xe1   : > { %p5690_p0 = scmp.lt.s32.totalorder %s5688_s2, %s5681_s10 }
  0xe2   : > { %p5684_p8 = pnand %p5682_p5, %p6894_p3 }
  0xe3   : > { %p5691_p2 = por %p5690_p0, %p5689_p12 }
  0xe4   : > { %p5685_p9 = pneg %p5684_p8 }
  0xe6   : > { %p5692_p11 = pnand %p5691_p2, %p5685_p9 }
  0xe8   : > { %5695 = shalt.err (!%p5692_p11)
}
  0xe9   : > { %4791 = dma.hbm_to_vmem [thread:$0]  (!%p6895_p13), %s6823_s9, 16, %s617_s1, [#allocation17]  }
  0xea   : > { %s5707_s23 = scalar_lea.vmem %s641_s27, 16  ;;  %s5714_s26 = scalar_lea.vmem %s641_s27, 32 }
  0xeb   : > { %p5708_p10 = scmp.ne.s32.totalorder %s641_s27, %s5707_s23  ;;  %p5715_p6 = scmp.lt.s32.totalorder %s641_s27, %s641_s27 }
  0xec   : > { %p5716_p7 = scmp.lt.s32.totalorder %s5714_s26, %s5707_s23 }
  0xed   : > { %p5710_p1 = pnand %p5708_p10, %p6894_p3 }
  0xee   : > { %p5717_p5 = por %p5716_p7, %p5715_p6 }
  0xef   : > { %p5711_p4 = pneg %p5710_p1 }
  0xf1   : > { %p5718_p8 = pnand %p5717_p5, %p5711_p4 }
  0xf3   : > { %5721 = shalt.err (!%p5718_p8)
}
  0xf4   : > { %4797 = dma.hbm_to_vmem [thread:$0]  (!%p6895_p13), %s6825_s11, 16, %s641_s27, [#allocation20]  }
  0xf5   : > { %s5955_s21 = smov [#allocation24]   ;;  %s5956_s16 = smov [#allocation27]  }
  0xf6   : > { %s664_s1 = sshll.u32 %s5955_s21, 4  ;;  %s688_s10 = sshll.u32 %s5956_s16, 4  ;;  %s665_s1 = int_to_ptr.vmem [resolvable:$true] %s664_s1  ;;  %s689_s10 = int_to_ptr.vmem [resolvable:$true] %s688_s10 }
  0xf7   : > { %s5733_s2 = scalar_lea.vmem %s665_s1, 16  ;;  %s5740_s29 = scalar_lea.vmem %s665_s1, 32 }
  0xf8   : > { %p5734_p9 = scmp.ne.s32.totalorder %s665_s1, %s5733_s2  ;;  %p5741_p2 = scmp.lt.s32.totalorder %s665_s1, %s665_s1 }
  0xf9   : > { %p5742_p11 = scmp.lt.s32.totalorder %s5740_s29, %s5733_s2 }
  0xfa   : > { %p5736_p12 = pnand %p5734_p9, %p6894_p3 }
  0xfb   : > { %p5743_p10 = por %p5742_p11, %p5741_p2 }
  0xfc   : > { %p5737_p0 = pneg %p5736_p12 }
  0xfe   : > { %p5744_p1 = pnand %p5743_p10, %p5737_p0 }
 0x100   : > { %5747 = shalt.err (!%p5744_p1)
}
 0x101   : > { %4803 = dma.hbm_to_vmem [thread:$0]  (!%p6895_p13), %s6827_s13, 16, %s665_s1, [#allocation23]  }
 0x102   : > { %s4120_s23 = sshll.u32 %s6223_s20, 1  ;;  %s5759_s26 = scalar_lea.vmem %s689_s10, 16 }
 0x103   : > { %p5760_p4 = scmp.ne.s32.totalorder %s689_s10, %s5759_s26  ;;  %s5766_s14 = scalar_lea.vmem %s689_s10, 32 }
 0x104   : > { %p5767_p5 = scmp.lt.s32.totalorder %s689_s10, %s689_s10  ;;  %p5768_p8 = scmp.lt.s32.totalorder %s5766_s14, %s5759_s26 }
 0x105   : > { %p5762_p6 = pnand %p5760_p4, %p6894_p3 }
 0x106   : > { %p5769_p9 = por %p5768_p8, %p5767_p5 }
 0x107   : > { %p5763_p7 = pneg %p5762_p6 }
 0x109   : > { %p5770_p12 = pnand %p5769_p9, %p5763_p7 }
 0x10b   : > { %5773 = shalt.err (!%p5770_p12)
}
 0x10c   : > { %4809 = dma.hbm_to_vmem [thread:$0]  (!%p6895_p13), %s6829_s15, 16, %s689_s10, [#allocation26]  }
 0x10d   : > { %s4472_s1 = sshll.u32 %s5932_s24, 5  ;;  %s6899_s0 = sld [smem:[#allocation62_spill]] }
 0x10e   : > { %s735_s6 = scalar_lea.vmem [#allocation30], %s4120_s23  ;;  %p6900_p0 = scmp.ne.s32.totalorder %s6892_s19, 0 }
 0x10f   : > { %s743_s27 = sshll.u32 %s735_s6, 4  ;;  %s744_s27 = int_to_ptr.vmem [resolvable:$true] %s743_s27 }
 0x113   : > { %s741_s29 = scalar_lea.hbm %s6899_s0, %s4472_s1  ;;  %s5779_s8 = scalar_lea.hbm %s6899_s0, 160 }
 0x114   : > { %s5774_s26 = scalar_lea.hbm %s741_s29, 32  ;;  %p5780_p13 = scmp.lt.s32.totalorder %s741_s29, %s6899_s0 }
 0x115   : > { %p5775_p3 = scmp.ne.s32.totalorder %s741_s29, %s5774_s26  ;;  %p5781_p10 = scmp.lt.s32.totalorder %s5779_s8, %s5774_s26 }
 0x117   : > { %p5777_p2 = pnand %p5775_p3, %p6900_p0  ;;  %p5782_p1 = por %p5781_p10, %p5780_p13 }
 0x119   : > { %p5778_p11 = pneg %p5777_p2 }
 0x11b   : > { %p5783_p4 = pnand %p5782_p1, %p5778_p11 }
 0x11d   : > { %5786 = shalt.err (!%p5783_p4)
}
 0x11e   : > { %s5787_s10 = scalar_lea.vmem %s744_s27, 32  ;;  %s5957_s23 = smov [#allocation30]  }
 0x11f   : > { %p5788_p6 = scmp.ne.s32.totalorder %s744_s27, %s5787_s10  ;;  %s5792_s1 = sshll.u32 %s5957_s23, 4  ;;  %s5793_s1 = int_to_ptr.vmem [resolvable:$false] %s5792_s1 }
 0x120   : > { %s5794_s16 = scalar_lea.vmem %s5793_s1, 64  ;;  %p5795_p8 = scmp.lt.s32.totalorder %s744_s27, %s5793_s1 }
 0x121   : > { %p5790_p7 = pnand %p5788_p6, %p6900_p0  ;;  %p5796_p9 = scmp.lt.s32.totalorder %s5794_s16, %s5787_s10 }
 0x123   : > { %p5791_p5 = pneg %p5790_p7  ;;  %p5797_p12 = por %p5796_p9, %p5795_p8 }
 0x125   : > { %p5798_p3 = pnand %p5797_p12, %p5791_p5 }
 0x127   : > { %5801 = shalt.err (!%p5798_p3)
}
 0x128   : > { %p6901_p2 = scmp.ne.s32.totalorder %s6889_s25, 0  ;;  %s4123_s5 = sshll.u32 %s6223_s20, 7 }
 0x129   : > { %s4473_s2 = sshll.u32 %s5932_s24, 11  ;;  %s6902_s4 = sld [smem:[#allocation63_spill]] }
 0x12a   : > { %4819 = dma.hbm_to_vmem [thread:$0]  (!%p6901_p2), %s741_s29, 32, %s744_s27, %s6240_s12  }
 0x12b   : > { %s754_s8 = scalar_lea.vmem [#allocation31], %s4123_s5  ;;  %s6903_s10 = sand.u32 1, %s5932_s24  }
 0x12c   : > { %s761_s21 = sshll.u32 %s754_s8, 4  ;;  %s751_s23 = scalar_lea.sflag [#allocation32], %s6903_s10  ;;  %s6351_s21 = int_to_ptr.vmem [resolvable:$true] %s761_s21 }
 0x12f   : > { %s6349_s14 = scalar_lea.hbm %s6902_s4, %s4473_s2  ;;  %s5807_s29 = scalar_lea.hbm %s6902_s4, 10240 }
 0x130   : > { %s5802_s1 = scalar_lea.hbm %s6349_s14, 2048  ;;  %p5808_p1 = scmp.lt.s32.totalorder %s6349_s14, %s6902_s4 }
 0x131   : > { %p5803_p11 = scmp.ne.s32.totalorder %s6349_s14, %s5802_s1  ;;  %p5809_p4 = scmp.lt.s32.totalorder %s5807_s29, %s5802_s1 }
 0x133   : > { %p5805_p13 = pnand %p5803_p11, %p6900_p0  ;;  %p5810_p6 = por %p5809_p4, %p5808_p1 }
 0x135   : > { %p5806_p10 = pneg %p5805_p13 }
 0x137   : > { %p5811_p7 = pnand %p5810_p6, %p5806_p10 }
 0x139   : > { %5814 = shalt.err (!%p5811_p7)
}
 0x13a   : > { %s5815_s24 = scalar_lea.vmem %s6351_s21, 2048  ;;  %s5958_s5 = smov [#allocation31]  }
 0x13b   : > { %p5816_p5 = scmp.ne.s32.totalorder %s6351_s21, %s5815_s24  ;;  %s5820_s2 = sshll.u32 %s5958_s5, 4  ;;  %s5821_s2 = int_to_ptr.vmem [resolvable:$false] %s5820_s2 }
 0x13c   : > { %s5822_s6 = scalar_lea.vmem %s5821_s2, 4096  ;;  %p5823_p12 = scmp.lt.s32.totalorder %s6351_s21, %s5821_s2 }
 0x13d   : > { %p5818_p8 = pnand %p5816_p5, %p6900_p0  ;;  %p5824_p3 = scmp.lt.s32.totalorder %s5822_s6, %s5815_s24 }
 0x13f   : > { %p5819_p9 = pneg %p5818_p8  ;;  %p5825_p11 = por %p5824_p3, %p5823_p12 }
 0x141   : > { %p5826_p13 = pnand %p5825_p11, %p5819_p9 }
 0x143   : > { %5829 = shalt.err (!%p5826_p13)
}
 0x144   : > { %4822 = dma.hbm_to_vmem [thread:$0]  (!%p6901_p2), %s6349_s14, 2048, %s6351_s21, %s751_s23, %s6881_s28, %s6881_s28, %s6880_s17  }
 0x145   : > { %s6904_s19 = sld [smem:[#allocation48_spill]] }
 0x14b   : > { %p6905_p0 = scmp.ne.s32.totalorder %s6904_s19, 0 }
 0x14c   : > { %p6906_p10 = scmp.eq.s32.totalorder (!%p6905_p0), %s6089_s3, 0 }
 0x14d   : > { %773 = sbr.rel (%p6905_p0) target bundleno = 1976 (0x7b8), region = 100 }
 0x152   : > { %5871 = dma.done.wait (%p6906_p10), [#allocation5], 64   ;;  %p6907_p1 = pmov %p6906_p10 }
 0x154   : > { %5873 = vsyncadd (%p6907_p1), [#allocation5], 4294967232  ;;  %p6908_p4 = pmov %p6907_p1 }
 0x155   : > { %p6909_p6 = pmov %p6907_p1 }
 0x156   : > { %5875 = dma.done.wait (%p6908_p4), [#allocation8], 256  }
 0x157   : > { %5877 = vsyncadd (%p6909_p6), [#allocation8], 4294967040  ;;  %p6910_p7 = pmov %p6907_p1 }
 0x158   : > { %p6911_p2 = pmov %p6907_p1 }
 0x159   : > { %5879 = dma.done.wait (%p6910_p7), [#allocation11], 528  }
 0x15a   : > { %5881 = vsyncadd (%p6911_p2), [#allocation11], 4294966768  ;;  %p6912_p5 = pmov %p6907_p1 }
 0x15b   : > { %p6913_p8 = pmov %p6907_p1 }
 0x15c   : > { %5883 = dma.done.wait (%p6912_p5), [#allocation14], 5280  }
 0x15d   : > { %5885 = vsyncadd (%p6913_p8), [#allocation14], 4294962016  ;;  %p6914_p9 = pmov %p6907_p1 }
 0x15e   : > { %p6915_p12 = pmov %p6907_p1 }
 0x15f   : > { %5887 = dma.done.wait (%p6914_p9), [#allocation17], 1040  }
 0x160   : > { %5889 = vsyncadd (%p6915_p12), [#allocation17], 4294966256  ;;  %p6916_p3 = pmov %p6907_p1 }
 0x161   : > { %p6917_p11 = pmov %p6907_p1 }
 0x162   : > { %5891 = dma.done.wait (%p6916_p3), [#allocation20], 1040  }
 0x163   : > { %5893 = vsyncadd (%p6917_p11), [#allocation20], 4294966256  ;;  %p6918_p13 = pmov %p6907_p1 }
 0x164   : > { %p6919_p0 = pmov %p6907_p1 }
 0x165   : > { %5895 = dma.done.wait (%p6918_p13), [#allocation23], 1040  }
 0x166   : > { %5897 = vsyncadd (%p6919_p0), [#allocation23], 4294966256  ;;  %p6920_p10 = pmov %p6919_p0 }
 0x167   : > { %p6921_p1 = pmov %p6919_p0 }
 0x168   : > { %5899 = dma.done.wait (%p6920_p10), [#allocation26], 1040  }
 0x169   : > { %5901 = vsyncadd (%p6921_p1), [#allocation26], 4294966256  ;;  %s835_s17 = sand.u32 1, %s6089_s3   ;;  %s837_s28 = sand.u32 1, %s5924_s22  }
 0x16a   : > { %s4689_s25 = smul.u32 1536, %s837_s28  ;;  %s836_s26 = scalar_lea.sflag [#allocation29], %s835_s17 }
 0x16b   : > { %p6922_p4 = scmp.ne.s32.totalorder %s6888_s18, 0 }
 0x16c   : > { %s6414_s14 = scalar_lea.vmem [#allocation28], %s4689_s25 }
 0x16d   : > { %5903 = dma.done.wait (%p6922_p4), %s836_s26, 24608  }
 0x16e   : > { %5905 = vsyncadd (%p6922_p4), %s836_s26, 4294942688  ;;  %s4142_s8 = sshll.u32 %s837_s28, 1  ;;  %s4143_s21 = sshll.u32 %s837_s28, 7 }
 0x16f   : > { %s6420_s10 = scalar_lea.vmem [#allocation30], %s4142_s8  ;;  %s854_s23 = scalar_lea.sflag [#allocation32], %s835_s17 }
 0x170   : > { %s6422_s1 = scalar_lea.vmem [#allocation31], %s4143_s21 }
 0x171   : > { %5907 = dma.done.wait (%p6922_p4), %s854_s23, 2048  }
 0x172   : > { %5909 = vsyncadd (%p6922_p4), %s854_s23, 4294965248  ;;  %p6923_p6 = pmov %p6919_p0 }
 0x173   : > { %p6924_p7 = pmov %p6919_p0 }
 0x174   : > { %5911 = dma.done.wait (%p6923_p6), [#allocation32], 16  }
 0x175   : > { %5913 = vsyncadd (%p6924_p7), [#allocation32], 4294967280  ;;  %p6925_p2 = scmp.ne.s32.totalorder %s6089_s3, 0 }
 0x176   : > { %s6926_s29 = sld [smem:[#allocation50_spill]] (!%p6925_p2) }
 0x177   : > { %930 = sbr.rel (%p6925_p2) target bundleno = 1328 (0x530), region = 180 }
 0x17c   : > { %v4916_v0 = vld [vmem:[#allocation10 + $0x18] sm:$0xff]   ;;  %v4917_v1 = vld [vmem:[#allocation10 + $0x10] sm:$0xff]   ;;  %v4918_v2 = vld [vmem:[#allocation10 + $0x8] sm:$0xff]   ;;  %vm994_vm0 = vcmask 523264   ;;  %v5959_v28 = vmov 0.0   ;;  %vm5960_vm1 = vmmov 0  }
 0x17d   : > { %4564 = vmatprep.subr.bf16.mxu0 %v4916_v0  ;;  %v931_v3 = vld [vmem:[%s6926_s29] sm:$0xff]  ;;  %v932_v4 = vld [vmem:[%s6926_s29 + $0x8] sm:$0xff]  ;;  %v933_v7 = vld [vmem:[%s6926_s29 + $0x10] sm:$0xff]  ;;  %4588 = vmatprep.subr.bf16.mxu1 %v5959_v28  ;;  %2185 = vst [vmem:[#allocation3] sm:$0xff] %v5959_v28 }
 0x17e   : > { %4565 = vmatpush3.bf16.msra.mxu0 %v4916_v0  ;;  %v947_v5 = vpack.c.bf16 %v932_v4, %v931_v3  ;;  %v4919_v6 = vld [vmem:[#allocation10] sm:$0xff]   ;;  %v934_v8 = vld [vmem:[%s6926_s29 + $0x18] sm:$0xff]  ;;  %v935_v9 = vld [vmem:[%s6926_s29 + $0x20] sm:$0xff]  ;;  %4604 = vmatprep.mubr.msk.bf16.mxu1 %vm5960_vm1, %v5959_v28 }
 0x17f   : > { %4566 = vmatprep.subr.bf16.mxu0 %v4917_v1  ;;  %v936_v10 = vld [vmem:[%s6926_s29 + $0x28] sm:$0xff]  ;;  %v948_v11 = vpack.c.bf16 %v934_v8, %v933_v7  ;;  %v937_v13 = vld [vmem:[%s6926_s29 + $0x30] sm:$0xff]  ;;  %v938_v14 = vld [vmem:[%s6926_s29 + $0x38] sm:$0xff] }
 0x180   : > { %4572 = vmatprep.mubr.msk.bf16.mxu0 %vm994_vm0, %v947_v5  ;;  %v949_v12 = vpack.c.bf16 %v936_v10, %v935_v9  ;;  %v939_v15 = vld [vmem:[%s6926_s29 + $0x40] sm:$0xff]  ;;  %v940_v16 = vld [vmem:[%s6926_s29 + $0x48] sm:$0xff]  ;;  %v950_v17 = vpack.c.bf16 %v938_v14, %v937_v13  ;;  %v941_v19 = vld [vmem:[%s6926_s29 + $0x50] sm:$0xff] }
 0x181   : > { %v951_v18 = vpack.c.bf16 %v940_v16, %v939_v15  ;;  %v942_v20 = vld [vmem:[%s6926_s29 + $0x58] sm:$0xff]  ;;  %v943_v21 = vld [vmem:[%s6926_s29 + $0x60] sm:$0xff]  ;;  %v944_v22 = vld [vmem:[%s6926_s29 + $0x68] sm:$0xff] }
 0x182   : > { %4567 = vmatpush3.bf16.msra.mxu0 %v4917_v1  ;;  %v952_v23 = vpack.c.bf16 %v942_v20, %v941_v19  ;;  %v953_v24 = vpack.c.bf16 %v944_v22, %v943_v21  ;;  %v945_v25 = vld [vmem:[%s6926_s29 + $0x70] sm:$0xff]  ;;  %v946_v26 = vld [vmem:[%s6926_s29 + $0x78] sm:$0xff]  ;;  %v4922_v30 = vld [vmem:[#allocation13 + $0xf4] ss:$40 sps:$4 sm:$0xff]  }
 0x183   : > { %4568 = vmatprep.subr.bf16.mxu0 %v4918_v2  ;;  %v954_v27 = vpack.c.bf16 %v946_v26, %v945_v25  ;;  %v4920_v29 = vld [vmem:[#allocation13 + $0xf0] ss:$40 sps:$4 sm:$0xff]   ;;  %v4928_v31 = vld [vmem:[#allocation13 + $0xa4] ss:$40 sps:$4 sm:$0xff]   ;;  %v4926_v32 = vld [vmem:[#allocation13 + $0xa0] ss:$40 sps:$4 sm:$0xff]  }
 0x184   : > { %v4934_v33 = vld [vmem:[#allocation13 + $0x54] ss:$40 sps:$4 sm:$0xff]   ;;  %v4932_v34 = vld [vmem:[#allocation13 + $0x50] ss:$40 sps:$4 sm:$0xff]   ;;  %v4940_v35 = vld [vmem:[#allocation13 + $0x4] ss:$40 sps:$4 sm:$0xff]  }
 0x185   : > { %v4938_v36 = vld [vmem:[#allocation13] ss:$40 sps:$4 sm:$0xff]   ;;  %v4146_v50 = vld [vmem:[#allocation12] ss:$0 sm:$0xff] }
 0x186   : > { %4569 = vmatpush3.bf16.msra.mxu0 %v4918_v2 }
 0x187   : > { %4570 = vmatprep.subr.bf16.mxu0 %v4919_v6 }
 0x18a   : > { %4571 = vmatpush3.bf16.msra.mxu0 %v4919_v6 }
 0x18b   : > { %1487 = vmatprep.subr.bf16.mxu0 %v4922_v30  ;;  %v4925_v30 = vld [vmem:[#allocation13 + $0xfc] ss:$40 sps:$4 sm:$0xff]  }
 0x18d   : > { %4573 = vmatmul.mubr.msk.bf16.vlgmr.msra.gmra.mxu0 %vm994_vm0, %v948_v11 }
 0x18e   : > { %4576 = vmatprep.mubr.msk.bf16.mxu0 %vm994_vm0, %v949_v12  ;;  %1488 = vmatpush1.bf16.msra.mxu0 %v4920_v29 }
 0x18f   : > { %1489 = vmatprep.subr.bf16.mxu0 %v4928_v31 }
 0x192   : > { %1490 = vmatpush1.bf16.msra.mxu0 %v4926_v32  ;;  %v1132_v32 = vld [vmem:[#allocation4] sm:$0xf] }
 0x193   : > { %1491 = vmatprep.subr.bf16.mxu0 %v4934_v33  ;;  %v4923_v33 = vld [vmem:[#allocation13 + $0xf8] ss:$40 sps:$4 sm:$0xff]  }
 0x195   : > { %4577 = vmatmul.mubr.msk.bf16.gmra.mxu0 %vm994_vm0, %v950_v17 }
 0x196   : > { %4580 = vmatprep.mubr.msk.bf16.mxu0 %vm994_vm0, %v951_v18  ;;  %1492 = vmatpush1.bf16.msra.mxu0 %v4932_v34  ;;  %v4931_v34 = vld [vmem:[#allocation13 + $0xac] ss:$40 sps:$4 sm:$0xff]  }
 0x197   : > { %1493 = vmatprep.subr.bf16.mxu0 %v4940_v35  ;;  %v4929_v35 = vld [vmem:[#allocation13 + $0xa8] ss:$40 sps:$4 sm:$0xff]  }
 0x19a   : > { %1494 = vmatpush1.bf16.msra.mxu0 %v4938_v36  ;;  %v4937_v36 = vld [vmem:[#allocation13 + $0x5c] ss:$40 sps:$4 sm:$0xff]  }
 0x19d   : > { %4581 = vmatmul.mubr.msk.bf16.gmra.mxu0 %vm994_vm0, %v952_v23 }
 0x19e   : > { %4584 = vmatprep.mubr.msk.bf16.mxu0 %vm994_vm0, %v953_v24 }
 0x1a5   : > { %4585 = vmatmul.mubr.msk.bf16.gmra.mxu0 %vm994_vm0, %v954_v27 }
 0x24d   : > { %v4574_v37 = vpop.f32.mrf.mxu0 }
 0x24e   : > { %v1062_v19 = vadd.f32 %v4574_v37, %v4146_v50  ;;  %v4935_v37 = vld [vmem:[#allocation13 + $0x58] ss:$40 sps:$4 sm:$0xff]  }
 0x24f   : > { %v1053_v38 = vpop.f32.mrf.mxu0 }
 0x250   : > { %v1118_v24 = vmax.f32 %v1062_v19, 0.0  ;;  %v1054_v25 = vadd.f32 %v4146_v50, %v1053_v38  ;;  %v4943_v38 = vld [vmem:[#allocation13 + $0xc] ss:$40 sps:$4 sm:$0xff]  }
 0x251   : > { %v4575_v39 = vpop.f32.mrf.mxu0  ;;  %v4991_v19 = vld [vmem:[#allocation22 + $0x20] sm:$0xff]  }
 0x252   : > { %v1065_v16 = vadd.f32 %v4575_v39, %v4146_v50  ;;  %v1116_v29 = vmax.f32 %v1054_v25, 0.0  ;;  %v4941_v39 = vld [vmem:[#allocation13 + $0x8] ss:$40 sps:$4 sm:$0xff]  }
 0x253   : > { %v1056_v40 = vpop.f32.mrf.mxu0 }
 0x254   : > { %v1119_v21 = vmax.f32 %v1065_v16, 0.0  ;;  %v1057_v22 = vadd.f32 %v4146_v50, %v1056_v40  ;;  %v4946_v40 = vld [vmem:[#allocation13 + $0x104] ss:$40 sps:$4 sm:$0xff]  }
 0x255   : > { %v4578_v41 = vpop.f32.mrf.mxu0  ;;  %1569 = vmatprep.subr.bf16.mxu0 %v4946_v40  ;;  %v4988_v16 = vld [vmem:[#allocation22 + $0x38] sm:$0xff]  }
 0x256   : > { %v1078_v9 = vadd.f32 %v4578_v41, %v4146_v50  ;;  %v1134_v26 = vpack.c.bf16 %v1119_v21, %v1118_v24  ;;  %v1117_v27 = vmax.f32 %v1057_v22, 0.0  ;;  %v4949_v41 = vld [vmem:[#allocation13 + $0x10c] ss:$40 sps:$4 sm:$0xff]   ;;  %v4993_v21 = vld [vmem:[#allocation22 + $0x10] sm:$0xff]  }
 0x257   : > { %v1069_v42 = vpop.f32.mrf.mxu0  ;;  %v4994_v22 = vld [vmem:[#allocation22 + $0x8] sm:$0xff]  }
 0x258   : > { %v1122_v14 = vmax.f32 %v1078_v9, 0.0  ;;  %v1070_v15 = vadd.f32 %v4146_v50, %v1069_v42  ;;  %v1133_v31 = vpack.c.bf16 %v1117_v27, %v1116_v29  ;;  %v5961_v42 = vmov 0   ;;  %v4983_v9 = vld [vmem:[#allocation16 + $0x20] sm:$0xff]   ;;  %v1910_v24 = vld [vmem:[#allocation9] sm:$0xff] }
 0x259   : > { %v4579_v43 = vpop.f32.mrf.mxu0  ;;  %1511 = vmatprep.mubr.bf16.mxu0 %v5961_v42  ;;  %v1911_v25 = vpack.c.bf16 %v1910_v24, %v1910_v24  ;;  %v4997_v27 = vld [vmem:[#allocation19 + $0x30] sm:$0xff]   ;;  %v4998_v29 = vld [vmem:[#allocation19 + $0x28] sm:$0xff]  }
 0x25a   : > { %v1081_v6 = vadd.f32 %v4579_v43, %v4146_v50  ;;  %v1120_v20 = vmax.f32 %v1070_v15, 0.0 }
 0x25b   : > { %v1072_v44 = vpop.f32.mrf.mxu0 }
 0x25c   : > { %v1123_v11 = vmax.f32 %v1081_v6, 0.0  ;;  %v1073_v12 = vadd.f32 %v4146_v50, %v1072_v44  ;;  %v4944_v44 = vld [vmem:[#allocation13 + $0x100] ss:$40 sps:$4 sm:$0xff]   ;;  %v4979_v6 = vld [vmem:[#allocation16 + $0x28] sm:$0xff]  }
 0x25d   : > { %v4582_v45 = vpop.f32.mrf.mxu0 }
 0x25e   : > { %v1094_v63 = vadd.f32 %v4582_v45, %v4146_v50  ;;  %v1136_v17 = vpack.c.bf16 %v1123_v11, %v1122_v14  ;;  %v1121_v18 = vmax.f32 %v1073_v12, 0.0  ;;  %v4947_v45 = vld [vmem:[#allocation13 + $0x108] ss:$40 sps:$4 sm:$0xff]   ;;  %v4985_v11 = vld [vmem:[#allocation16 + $0x10] sm:$0xff]  }
 0x25f   : > { %v1085_v46 = vpop.f32.mrf.mxu0  ;;  %v4986_v12 = vld [vmem:[#allocation16 + $0x8] sm:$0xff]  }
 0x260   : > { %v1126_v4 = vmax.f32 %v1094_v63, 0.0  ;;  %v1086_v5 = vadd.f32 %v4146_v50, %v1085_v46  ;;  %v1135_v23 = vpack.c.bf16 %v1121_v18, %v1120_v20  ;;  %v4968_v63 = vld [vmem:[#allocation13 + $0x110] ss:$40 sps:$4 sm:$0xff]   ;;  %v4992_v20 = vld [vmem:[#allocation22 + $0x18] sm:$0xff]  }
 0x261   : > { %v4583_v47 = vpop.f32.mrf.mxu0  ;;  %v1684_v14 = vld [vmem:[#allocation7] sm:$0xff]  ;;  %v4990_v18 = vld [vmem:[#allocation22 + $0x28] sm:$0xff]  }
 0x262   : > { %v1097_v60 = vadd.f32 %v4583_v47, %v4146_v50  ;;  %v1124_v10 = vmax.f32 %v1086_v5, 0.0  ;;  %v4952_v47 = vld [vmem:[#allocation13 + $0xb4] ss:$40 sps:$4 sm:$0xff]   ;;  %v4976_v5 = vld [vmem:[#allocation13 + $0x70] ss:$40 sps:$4 sm:$0xff]   ;;  %v1685_v15 = vpack.c.bf16 %v1684_v14, %v1684_v14 }
 0x263   : > { %v1088_v48 = vpop.f32.mrf.mxu0 }
 0x264   : > { %v1127_v1 = vmax.f32 %v1097_v60, 0.0  ;;  %v1089_v2 = vadd.f32 %v4146_v50, %v1088_v48  ;;  %v4955_v48 = vld [vmem:[#allocation13 + $0xbc] ss:$40 sps:$4 sm:$0xff]   ;;  %v4962_v60 = vld [vmem:[#allocation13 + $0x10] ss:$40 sps:$4 sm:$0xff]  }
 0x265   : > { %v4586_v49 = vpop.f32.mrf.mxu0 }
 0x266   : > { %v1110_v52 = vadd.f32 %v4586_v49, %v4146_v50  ;;  %v1138_v7 = vpack.c.bf16 %v1127_v1, %v1126_v4  ;;  %v1125_v8 = vmax.f32 %v1089_v2, 0.0  ;;  %v4974_v1 = vld [vmem:[#allocation13 + $0xc4] ss:$40 sps:$4 sm:$0xff]   ;;  %v4972_v2 = vld [vmem:[#allocation13 + $0xc0] ss:$40 sps:$4 sm:$0xff]  }
 0x267   : > { %v1101_v51 = vpop.f32.mrf.mxu0  ;;  %v4978_v4 = vld [vmem:[#allocation13 + $0x74] ss:$40 sps:$4 sm:$0xff]  }
 0x268   : > { %v1130_v56 = vmax.f32 %v1110_v52, 0.0  ;;  %v1102_v57 = vadd.f32 %v4146_v50, %v1101_v51  ;;  %v1137_v13 = vpack.c.bf16 %v1125_v8, %v1124_v10  ;;  %v4950_v51 = vld [vmem:[#allocation13 + $0xb0] ss:$40 sps:$4 sm:$0xff]   ;;  %v4980_v8 = vld [vmem:[#allocation13 + $0x20] ss:$40 sps:$4 sm:$0xff]  }
 0x269   : > { %v4587_v53 = vpop.f32.mrf.mxu0  ;;  %v4953_v52 = vld [vmem:[#allocation13 + $0xb8] ss:$40 sps:$4 sm:$0xff]  }
 0x26a   : > { %v1113_v54 = vadd.f32 %v4587_v53, %v4146_v50  ;;  %v1128_v0 = vmax.f32 %v1102_v57, 0.0  ;;  %v4958_v53 = vld [vmem:[#allocation13 + $0x64] ss:$40 sps:$4 sm:$0xff]   ;;  %v4959_v57 = vld [vmem:[#allocation13 + $0x68] ss:$40 sps:$4 sm:$0xff]  }
 0x26b   : > { %v1104_v55 = vpop.f32.mrf.mxu0  ;;  %v4984_v10 = vld [vmem:[#allocation16 + $0x18] sm:$0xff]  }
 0x26c   : > { %v1131_v58 = vmax.f32 %v1113_v54, 0.0  ;;  %v1105_v59 = vadd.f32 %v4146_v50, %v1104_v55  ;;  %v4961_v54 = vld [vmem:[#allocation13 + $0x6c] ss:$40 sps:$4 sm:$0xff]  }
 0x26e   : > { %v1129_v61 = vmax.f32 %v1105_v59, 0.0  ;;  %v1140_v62 = vpack.c.bf16 %v1131_v58, %v1130_v56  ;;  %v4956_v56 = vld [vmem:[#allocation13 + $0x60] ss:$40 sps:$4 sm:$0xff]   ;;  %v4964_v58 = vld [vmem:[#allocation13 + $0x14] ss:$40 sps:$4 sm:$0xff]  }
 0x26f   : > { %v4967_v59 = vld [vmem:[#allocation13 + $0x1c] ss:$40 sps:$4 sm:$0xff]  }
 0x270   : > { %4589 = vmatpush3.bf16.msra.mxu1 %v1140_v62  ;;  %v1139_v3 = vpack.c.bf16 %v1129_v61, %v1128_v0  ;;  %v4965_v61 = vld [vmem:[#allocation13 + $0x18] ss:$40 sps:$4 sm:$0xff]   ;;  %v4970_v62 = vld [vmem:[#allocation13 + $0x114] ss:$40 sps:$4 sm:$0xff]  }
 0x271   : > { %4590 = vmatprep.subr.bf16.mxu1 %v5959_v28  ;;  %v4971_v0 = vld [vmem:[#allocation16 + $0x38] sm:$0xff]  }
 0x274   : > { %4591 = vmatpush3.bf16.msra.mxu1 %v1139_v3  ;;  %v4975_v3 = vld [vmem:[#allocation16 + $0x30] sm:$0xff]  }
 0x275   : > { %4592 = vmatprep.subr.bf16.mxu1 %v5959_v28 }
 0x278   : > { %4593 = vmatpush3.bf16.msra.mxu1 %v1138_v7  ;;  %v4982_v7 = vld [vmem:[#allocation13 + $0x24] ss:$40 sps:$4 sm:$0xff]  }
 0x279   : > { %4594 = vmatprep.subr.bf16.mxu1 %v5959_v28 }
 0x27c   : > { %4595 = vmatpush3.bf16.msra.mxu1 %v1137_v13  ;;  %v4987_v13 = vld [vmem:[#allocation16] sm:$0xff]  }
 0x27d   : > { %4596 = vmatprep.subr.bf16.mxu1 %v5959_v28 }
 0x280   : > { %4597 = vmatpush3.bf16.msra.mxu1 %v1136_v17  ;;  %v4989_v17 = vld [vmem:[#allocation22 + $0x30] sm:$0xff]  }
 0x281   : > { %4598 = vmatprep.subr.bf16.mxu1 %v5959_v28 }
 0x284   : > { %4599 = vmatpush3.bf16.msra.mxu1 %v1135_v23  ;;  %v4995_v23 = vld [vmem:[#allocation22] sm:$0xff]  }
 0x285   : > { %4600 = vmatprep.subr.bf16.mxu1 %v5959_v28 }
 0x288   : > { %4601 = vmatpush3.bf16.msra.mxu1 %v1134_v26  ;;  %v4996_v26 = vld [vmem:[#allocation19 + $0x38] sm:$0xff]  }
 0x289   : > { %4602 = vmatprep.subr.bf16.mxu1 %v5959_v28 }
 0x28c   : > { %4603 = vmatpush3.bf16.msra.mxu1 %v1133_v31  ;;  %v5000_v31 = vld [vmem:[#allocation19 + $0x18] sm:$0xff]  }
 0x28d   : > { %1528 = vmatprep.subr.bf16.mxu1 %v4925_v30  ;;  %v4999_v30 = vld [vmem:[#allocation19 + $0x20] sm:$0xff]  }
 0x28f   : > { %4605 = vmatmul.mubr.bf16.vlgmr.msra.gmra.mxu1 %v1132_v32  ;;  %v5001_v32 = vld [vmem:[#allocation19 + $0x10] sm:$0xff]  }
 0x290   : > { %1529 = vmatpush1.bf16.msra.mxu1 %v4923_v33  ;;  %1552 = vmatprep.mubr.bf16.mxu1 %v5961_v42  ;;  %v5002_v33 = vld [vmem:[#allocation19 + $0x8] sm:$0xff]  }
 0x291   : > { %1530 = vmatprep.subr.bf16.mxu1 %v4931_v34  ;;  %v5003_v34 = vld [vmem:[#allocation19] sm:$0xff]  }
 0x294   : > { %1531 = vmatpush1.bf16.msra.mxu1 %v4929_v35  ;;  %v1226_v35 = vlaneseq }
 0x295   : > { %1532 = vmatprep.subr.bf16.mxu1 %v4937_v36 }
 0x296   : > { %v1227_v36 = vshrl.u32 %v1226_v35, 7  ;;  %v5004_v35 = vld [vmem:[#allocation25 + $0x38] sm:$0xff]  }
 0x298   : > { %1533 = vmatpush1.bf16.msra.mxu1 %v4935_v37  ;;  %v1228_v37 = vsub.s32 0, %v1227_v36  ;;  %v1240_v40 = vsub.s32 3, %v1227_v36 }
 0x299   : > { %1534 = vmatprep.subr.bf16.mxu1 %v4943_v38  ;;  %v1236_v38 = vsub.s32 2, %v1227_v36 }
 0x29c   : > { %1535 = vmatpush1.bf16.msra.mxu1 %v4941_v39  ;;  %v1232_v39 = vsub.s32 1, %v1227_v36 }
 0x29d   : > { %1610 = vmatprep.subr.bf16.mxu1 %v4949_v41  ;;  %v1222_v41 = vld [vmem:[#allocation15] sm:$0xff] }
 0x34f   : > { %v1175_v43 = vpop.f32.mrf.mxu1 }
 0x350   : > { %v6501_v46 = vpack.c.bf16 %v1175_v43, %v1175_v43  ;;  %v1237_v43 = vrot.slane %v1222_v41, %v1236_v38 }
 0x351   : > { %v4606_v49 = vpop.f32.mrf.mxu1 }
 0x352   : > { %4199 = vmatmul.mubr.msk.bf16.vlgmr.msra.gmra.mxu0 %vm994_vm0, %v6501_v46  ;;  %4200 = vmatmul.mubr.msk.bf16.vlgmr.msra.gmra.mxu1 %vm994_vm0, %v6501_v46 }
 0x353   : > { %1570 = vmatpush1.bf16.msra.mxu0 %v4944_v44  ;;  %1611 = vmatpush1.bf16.msra.mxu1 %v4947_v45  ;;  %v1178_v50 = vpop.f32.mrf.mxu1  ;;  %v1233_v44 = vrot.slane %v1222_v41, %v1232_v39  ;;  %v1241_v45 = vrot.slane %v1222_v41, %v1240_v40  ;;  %v5007_v40 = vld [vmem:[#allocation25 + $0x20] sm:$0xff]  }
 0x354   : > { %1571 = vmatprep.subr.bf16.mxu0 %v4952_v47  ;;  %1612 = vmatprep.subr.bf16.mxu1 %v4955_v48 }
 0x355   : > { %v4607_v55 = vpop.f32.mrf.mxu1  ;;  %1593 = vmatprep.mubr.bf16.mxu0 %v5961_v42  ;;  %1634 = vmatprep.mubr.bf16.mxu1 %v5961_v42 }
 0x357   : > { %1572 = vmatpush1.bf16.msra.mxu0 %v4950_v51  ;;  %1613 = vmatpush1.bf16.msra.mxu1 %v4953_v52 }
 0x358   : > { %1573 = vmatprep.subr.bf16.mxu0 %v4958_v53  ;;  %1614 = vmatprep.subr.bf16.mxu1 %v4961_v54 }
 0x35b   : > { %1574 = vmatpush1.bf16.msra.mxu0 %v4956_v56  ;;  %1615 = vmatpush1.bf16.msra.mxu1 %v4959_v57 }
 0x35c   : > { %1575 = vmatprep.subr.bf16.mxu0 %v4964_v58  ;;  %1616 = vmatprep.subr.bf16.mxu1 %v4967_v59 }
 0x35f   : > { %1576 = vmatpush1.bf16.msra.mxu0 %v4962_v60  ;;  %1617 = vmatpush1.bf16.msra.mxu1 %v4965_v61  ;;  %v1244_v60 = vsub.s32 4, %v1227_v36  ;;  %v1252_v61 = vsub.s32 6, %v1227_v36 }
 0x360   : > { %1651 = vmatprep.subr.bf16.mxu0 %v4970_v62  ;;  %4608 = vmatprep.subr.bf16.mxu1 %v5959_v28  ;;  %v1248_v62 = vsub.s32 5, %v1227_v36 }
 0x362   : > { %4201 = vmatmul.mubr.msk.bf16.vlgmr.msra.gmra.mxu0 %vm994_vm0, %v6501_v46  ;;  %4202 = vmatmul.mubr.msk.bf16.vlgmr.msra.gmra.mxu1 %vm994_vm0, %v6501_v46 }
 0x363   : > { %1652 = vmatpush1.bf16.msra.mxu0 %v4968_v63  ;;  %4609 = vmatpush3.bf16.msra.mxu1 %v4971_v0  ;;  %v1256_v63 = vsub.s32 7, %v1227_v36  ;;  %v1245_v0 = vrot.slane %v1222_v41, %v1244_v60 }
 0x364   : > { %1653 = vmatprep.subr.bf16.mxu0 %v4974_v1  ;;  %4610 = vmatprep.subr.bf16.mxu1 %v5959_v28  ;;  %v1253_v1 = vrot.slane %v1222_v41, %v1252_v61 }
 0x365   : > { %1675 = vmatprep.mubr.bf16.mxu0 %v5961_v42  ;;  %4624 = vmatprep.mubr.msk.bf16.mxu1 %vm5960_vm1, %v5959_v28  ;;  %v1229_v42 = vrot.slane %v1222_v41, %v1228_v37 }
 0x367   : > { %1654 = vmatpush1.bf16.msra.mxu0 %v4972_v2  ;;  %4611 = vmatpush3.bf16.msra.mxu1 %v4975_v3  ;;  %v1249_v2 = vrot.slane %v1222_v41, %v1248_v62  ;;  %v1257_v3 = vrot.slane %v1222_v41, %v1256_v63  ;;  %v5008_v41 = vld [vmem:[#allocation25 + $0x18] sm:$0xff]  }
 0x368   : > { %1655 = vmatprep.subr.bf16.mxu0 %v4978_v4  ;;  %4612 = vmatprep.subr.bf16.mxu1 %v5959_v28 }
 0x36b   : > { %1656 = vmatpush1.bf16.msra.mxu0 %v4976_v5  ;;  %4613 = vmatpush3.bf16.msra.mxu1 %v4979_v6 }
 0x36c   : > { %1657 = vmatprep.subr.bf16.mxu0 %v4982_v7  ;;  %4614 = vmatprep.subr.bf16.mxu1 %v5959_v28 }
 0x36f   : > { %1658 = vmatpush1.bf16.msra.mxu0 %v4980_v8  ;;  %4615 = vmatpush3.bf16.msra.mxu1 %v4983_v9 }
 0x370   : > { %4616 = vmatprep.subr.bf16.mxu1 %v5959_v28  ;;  %4628 = vmatprep.subr.bf16.mxu0 %v5959_v28 }
 0x372   : > { %4203 = vmatmul.mubr.msk.bf16.vlgmr.msra.gmra.mxu0 %vm994_vm0, %v6501_v46 }
 0x373   : > { %4617 = vmatpush3.bf16.msra.mxu1 %v4984_v10  ;;  %4644 = vmatprep.mubr.msk.bf16.mxu0 %vm5960_vm1, %v5959_v28 }
 0x374   : > { %4618 = vmatprep.subr.bf16.mxu1 %v5959_v28  ;;  %4629 = vmatpush3.bf16.msra.mxu0 %v4996_v26 }
 0x375   : > { %4630 = vmatprep.subr.bf16.mxu0 %v5959_v28 }
 0x377   : > { %4619 = vmatpush3.bf16.msra.mxu1 %v4985_v11 }
 0x378   : > { %4620 = vmatprep.subr.bf16.mxu1 %v5959_v28  ;;  %4631 = vmatpush3.bf16.msra.mxu0 %v4997_v27 }
 0x379   : > { %4632 = vmatprep.subr.bf16.mxu0 %v5959_v28 }
 0x37b   : > { %4621 = vmatpush3.bf16.msra.mxu1 %v4986_v12 }
 0x37c   : > { %4622 = vmatprep.subr.bf16.mxu1 %v5959_v28  ;;  %4633 = vmatpush3.bf16.msra.mxu0 %v4998_v29  ;;  %v4204_v29 = vld [vmem:[#allocation18] ss:$0 sm:$0xff] }
 0x37d   : > { %4634 = vmatprep.subr.bf16.mxu0 %v5959_v28 }
 0x37f   : > { %4623 = vmatpush3.bf16.msra.mxu1 %v4987_v13 }
 0x380   : > { %4648 = vmatprep.subr.bf16.mxu1 %v5959_v28  ;;  %4635 = vmatpush3.bf16.msra.mxu0 %v4999_v30 }
 0x381   : > { %4636 = vmatprep.subr.bf16.mxu0 %v5959_v28 }
 0x382   : > { %4625 = vmatmul.mubr.bf16.vlgmr.msra.gmra.mxu1 %v1685_v15 }
 0x383   : > { %4649 = vmatpush3.bf16.msra.mxu1 %v4988_v16  ;;  %4664 = vmatprep.mubr.msk.bf16.mxu1 %vm5960_vm1, %v5959_v28 }
 0x384   : > { %4650 = vmatprep.subr.bf16.mxu1 %v5959_v28  ;;  %4637 = vmatpush3.bf16.msra.mxu0 %v5000_v31 }
 0x385   : > { %4638 = vmatprep.subr.bf16.mxu0 %v5959_v28 }
 0x387   : > { %4651 = vmatpush3.bf16.msra.mxu1 %v4989_v17 }
 0x388   : > { %4652 = vmatprep.subr.bf16.mxu1 %v5959_v28  ;;  %4639 = vmatpush3.bf16.msra.mxu0 %v5001_v32 }
 0x389   : > { %4640 = vmatprep.subr.bf16.mxu0 %v5959_v28 }
 0x38b   : > { %4653 = vmatpush3.bf16.msra.mxu1 %v4990_v18  ;;  %v1223_v18 = vld [vmem:[#allocation15 + $0x8] sm:$0x3] }
 0x38c   : > { %4654 = vmatprep.subr.bf16.mxu1 %v5959_v28  ;;  %4641 = vmatpush3.bf16.msra.mxu0 %v5002_v33 }
 0x38d   : > { %4642 = vmatprep.subr.bf16.mxu0 %v5959_v28 }
 0x38f   : > { %4655 = vmatpush3.bf16.msra.mxu1 %v4991_v19  ;;  %v1261_v19 = vrot.slane %v1223_v18, %v1228_v37  ;;  %v5005_v37 = vld [vmem:[#allocation25 + $0x30] sm:$0xff]  }
 0x390   : > { %4656 = vmatprep.subr.bf16.mxu1 %v5959_v28  ;;  %4643 = vmatpush3.bf16.msra.mxu0 %v5003_v34 }
 0x391   : > { %4668 = vmatprep.subr.bf16.mxu0 %v5959_v28 }
 0x393   : > { %4657 = vmatpush3.bf16.msra.mxu1 %v4992_v20  ;;  %v1265_v20 = vrot.slane %v1223_v18, %v1232_v39  ;;  %v5006_v39 = vld [vmem:[#allocation25 + $0x28] sm:$0xff]  }
 0x394   : > { %4658 = vmatprep.subr.bf16.mxu1 %v5959_v28 }
 0x397   : > { %4659 = vmatpush3.bf16.msra.mxu1 %v4993_v21 }
 0x398   : > { %4660 = vmatprep.subr.bf16.mxu1 %v5959_v28 }
 0x39b   : > { %4661 = vmatpush3.bf16.msra.mxu1 %v4994_v22 }
 0x39c   : > { %4662 = vmatprep.subr.bf16.mxu1 %v5959_v28 }
 0x39f   : > { %4663 = vmatpush3.bf16.msra.mxu1 %v4995_v23 }
 0x3a2   : > { %4665 = vmatmul.mubr.bf16.vlgmr.msra.gmra.mxu1 %v1911_v25 }
 0x412   : > { %v1513_v46 = vpop.f32.mrf.mxu0  ;;  %v1554_v47 = vpop.f32.mrf.mxu1 }
 0x413   : > { %v1514_v50 = vadd.f32 %v1513_v46, %v1229_v42  ;;  %v1555_v51 = vadd.f32 %v1554_v47, %v1237_v43  ;;  %v5009_v42 = vld [vmem:[#allocation25 + $0x10] sm:$0xff]   ;;  %v5010_v43 = vld [vmem:[#allocation25 + $0x8] sm:$0xff]   ;;  %v5011_v46 = vld [vmem:[#allocation25] sm:$0xff]  }
 0x414   : > { %v1515_v48 = vpop.f32.mrf.mxu0  ;;  %v1556_v49 = vpop.f32.mrf.mxu1 }
 0x415   : > { %v1516_v52 = vadd.f32 %v1515_v48, %v1233_v44  ;;  %v1557_v53 = vadd.f32 %v1556_v49, %v1241_v45  ;;  %v4222_v44 = vld [vmem:[#allocation24] ss:$0 sm:$0xff] }
 0x416   : > { %v1517_v54 = vpop.f32.mrf.mxu0  ;;  %v1558_v55 = vpop.f32.mrf.mxu1 }
 0x417   : > { %v4474_v56 = vpack.c.bf16 %v1516_v52, %v1514_v50  ;;  %v4475_v57 = vpack.c.bf16 %v1557_v53, %v1555_v51 }
 0x418   : > { %v1518_v58 = vpop.f32.mrf.mxu0  ;;  %v1559_v59 = vpop.f32.mrf.mxu1 }
 0x419   : > { %2176 = vst [vmem:[#allocation2 + $0x28] sm:$0xff] %v4474_v56  ;;  %2177 = vst [vmem:[#allocation2 + $0x10] sm:$0xff] %v4475_v57  ;;  %v4213_v57 = vld [vmem:[#allocation21] ss:$0 sm:$0xff]  ;;  %v4231_v58 = vld [vmem:[#allocation27] ss:$0 sm:$0xff] }
 0x422   : > { %v1595_v4 = vpop.f32.mrf.mxu0  ;;  %v1636_v5 = vpop.f32.mrf.mxu1 }
 0x423   : > { %v1596_v8 = vadd.f32 %v1595_v4, %v1245_v0  ;;  %v1637_v9 = vadd.f32 %v1636_v5, %v1253_v1 }
 0x424   : > { %v1597_v6 = vpop.f32.mrf.mxu0  ;;  %v1638_v7 = vpop.f32.mrf.mxu1 }
 0x425   : > { %v1598_v10 = vadd.f32 %v1597_v6, %v1249_v2  ;;  %v1639_v11 = vadd.f32 %v1638_v7, %v1257_v3 }
 0x426   : > { %v1599_v12 = vpop.f32.mrf.mxu0  ;;  %v1640_v13 = vpop.f32.mrf.mxu1 }
 0x427   : > { %v4476_v14 = vpack.c.bf16 %v1598_v10, %v1596_v8  ;;  %v4477_v15 = vpack.c.bf16 %v1639_v11, %v1637_v9 }
 0x428   : > { %v1600_v16 = vpop.f32.mrf.mxu0  ;;  %v1641_v17 = vpop.f32.mrf.mxu1 }
 0x429   : > { %2178 = vst [vmem:[#allocation2 + $0x8] sm:$0xff] %v4476_v14  ;;  %2179 = vst [vmem:[#allocation2] sm:$0xff] %v4477_v15 }
 0x432   : > { %v1677_v21 = vpop.f32.mrf.mxu0 }
 0x433   : > { %v1678_v23 = vadd.f32 %v1677_v21, %v1261_v19 }
 0x434   : > { %v1679_v22 = vpop.f32.mrf.mxu0 }
 0x435   : > { %v1680_v24 = vadd.f32 %v1679_v22, %v1265_v20 }
 0x436   : > { %v1681_v25 = vpop.f32.mrf.mxu0 }
 0x437   : > { %v4478_v26 = vpack.c.bf16 %v1680_v24, %v1678_v23 }
 0x438   : > { %v1682_v27 = vpop.f32.mrf.mxu0 }
 0x439   : > { %2180 = vst [vmem:[#allocation2 + $0x18] sm:$0xff] %v4478_v26 }
 0x442   : > { %v1791_v30 = vpop.f32.mrf.mxu1 }
 0x443   : > { %v1792_v31 = vadd.f32 %v4204_v29, %v1791_v30 }
 0x444   : > { %v4626_v32 = vpop.f32.mrf.mxu1 }
 0x445   : > { %v1797_v33 = vmax.f32 %v1792_v31, 0.0 }
 0x446   : > { %v1794_v34 = vpop.f32.mrf.mxu1 }
 0x447   : > { %v1798_v36 = vpack.c.bf16 %v1797_v33, %v1797_v33 }
 0x448   : > { %v4627_v38 = vpop.f32.mrf.mxu1 }
 0x449   : > { %4645 = vmatmul.mubr.bf16.vlgmr.msra.gmra.mxu0 %v1798_v36 }
 0x44a   : > { %4669 = vmatpush3.bf16.msra.mxu0 %v5004_v35  ;;  %4684 = vmatprep.mubr.msk.bf16.mxu0 %vm5960_vm1, %v5959_v28 }
 0x44b   : > { %4670 = vmatprep.subr.bf16.mxu0 %v5959_v28 }
 0x44e   : > { %4671 = vmatpush3.bf16.msra.mxu0 %v5005_v37 }
 0x44f   : > { %4672 = vmatprep.subr.bf16.mxu0 %v5959_v28 }
 0x452   : > { %4673 = vmatpush3.bf16.msra.mxu0 %v5006_v39 }
 0x453   : > { %4674 = vmatprep.subr.bf16.mxu0 %v5959_v28 }
 0x456   : > { %4675 = vmatpush3.bf16.msra.mxu0 %v5007_v40 }
 0x457   : > { %4676 = vmatprep.subr.bf16.mxu0 %v5959_v28 }
 0x45a   : > { %4677 = vmatpush3.bf16.msra.mxu0 %v5008_v41 }
 0x45b   : > { %4678 = vmatprep.subr.bf16.mxu0 %v5959_v28 }
 0x45e   : > { %4679 = vmatpush3.bf16.msra.mxu0 %v5009_v42 }
 0x45f   : > { %4680 = vmatprep.subr.bf16.mxu0 %v5959_v28 }
 0x462   : > { %v2017_v45 = vpop.f32.mrf.mxu1  ;;  %4681 = vmatpush3.bf16.msra.mxu0 %v5010_v43 }
 0x463   : > { %v2018_v47 = vadd.f32 %v4222_v44, %v2017_v45  ;;  %4682 = vmatprep.subr.bf16.mxu0 %v5959_v28 }
 0x464   : > { %v4666_v48 = vpop.f32.mrf.mxu1 }
 0x465   : > { %v2023_v49 = vmax.f32 %v2018_v47, 0.0 }
 0x466   : > { %v2020_v50 = vpop.f32.mrf.mxu1  ;;  %4683 = vmatpush3.bf16.msra.mxu0 %v5011_v46 }
 0x467   : > { %v2024_v51 = vpack.c.bf16 %v2023_v49, %v2023_v49 }
 0x468   : > { %v4667_v52 = vpop.f32.mrf.mxu1 }
 0x469   : > { %4685 = vmatmul.mubr.bf16.vlgmr.msra.gmra.mxu0 %v2024_v51 }
 0x509   : > { %v1904_v53 = vpop.f32.mrf.mxu0 }
 0x50a   : > { %v1905_v60 = vadd.f32 %v4213_v57, %v1904_v53 }
 0x50b   : > { %v4646_v54 = vpop.f32.mrf.mxu0 }
 0x50d   : > { %v1907_v55 = vpop.f32.mrf.mxu0 }
 0x50f   : > { %v4647_v56 = vpop.f32.mrf.mxu0 }
 0x529   : > { %v2130_v59 = vpop.f32.mrf.mxu0 }
 0x52a   : > { %v2131_v61 = vadd.f32 %v4231_v58, %v2130_v59 }
 0x52b   : > { %v4686_v62 = vpop.f32.mrf.mxu0 }
 0x52c   : > { %v4482_v63 = vpack.c.bf16 %v2131_v61, %v1905_v60 }
 0x52d   : > { %v2133_v0 = vpop.f32.mrf.mxu0 }
 0x52e   : > { %4484 = vst [vmem:[#allocation2 + $0x20] sm:$0xff] %v4482_v63  }
 0x52f   : > { %v4687_v28 = vpop.f32.mrf.mxu0 }
 0x530 PF: > { %v5012_v1 = vld [vmem:[%s6414_s14 + $0x74] ss:$8 sps:$4 sm:$0xff]   ;;  %v5016_v3 = vld [vmem:[%s6414_s14 + $0x70] ss:$8 sps:$4 sm:$0xff]   ;;  %v5018_v5 = vld [vmem:[%s6414_s14 + $0x64] ss:$8 sps:$4 sm:$0xff]  }
 0x531   : > { %v5014_v2 = vld [vmem:[%s6414_s14 + $0x174] ss:$8 sps:$4 sm:$0xff]   ;;  %3398 = vmatprep.subr.bf16.mxu0 %v5012_v1  ;;  %v5017_v4 = vld [vmem:[%s6414_s14 + $0x170] ss:$8 sps:$4 sm:$0xff]   ;;  %v5020_v6 = vld [vmem:[%s6414_s14 + $0x164] ss:$8 sps:$4 sm:$0xff]  }
 0x532   : > { %3439 = vmatprep.subr.bf16.mxu1 %v5014_v2  ;;  %3399 = vmatpush1.bf16.msra.mxu0 %v5016_v3  ;;  %v5022_v7 = vld [vmem:[%s6414_s14 + $0x60] ss:$8 sps:$4 sm:$0xff]   ;;  %v5024_v9 = vld [vmem:[%s6414_s14 + $0x54] ss:$8 sps:$4 sm:$0xff]   ;;  %v5028_v11 = vld [vmem:[%s6414_s14 + $0x50] ss:$8 sps:$4 sm:$0xff]  }
 0x533   : > { %3440 = vmatpush1.bf16.msra.mxu1 %v5017_v4  ;;  %3400 = vmatprep.subr.bf16.mxu0 %v5018_v5  ;;  %v5023_v8 = vld [vmem:[%s6414_s14 + $0x160] ss:$8 sps:$4 sm:$0xff]   ;;  %v5026_v10 = vld [vmem:[%s6414_s14 + $0x154] ss:$8 sps:$4 sm:$0xff]   ;;  %v5029_v12 = vld [vmem:[%s6414_s14 + $0x150] ss:$8 sps:$4 sm:$0xff]  }
 0x534   : > { %3441 = vmatprep.subr.bf16.mxu1 %v5020_v6  ;;  %v5030_v13 = vld [vmem:[%s6414_s14 + $0x44] ss:$8 sps:$4 sm:$0xff]   ;;  %v5034_v15 = vld [vmem:[%s6414_s14 + $0x40] ss:$8 sps:$4 sm:$0xff]   ;;  %v5036_v17 = vld [vmem:[%s6414_s14 + $0x34] ss:$8 sps:$4 sm:$0xff]  }
 0x535   : > { %v5032_v14 = vld [vmem:[%s6414_s14 + $0x144] ss:$8 sps:$4 sm:$0xff]   ;;  %v5035_v16 = vld [vmem:[%s6414_s14 + $0x140] ss:$8 sps:$4 sm:$0xff]   ;;  %v5038_v18 = vld [vmem:[%s6414_s14 + $0x134] ss:$8 sps:$4 sm:$0xff]  }
 0x536   : > { %3401 = vmatpush1.bf16.msra.mxu0 %v5022_v7  ;;  %v5040_v19 = vld [vmem:[%s6414_s14 + $0x30] ss:$8 sps:$4 sm:$0xff]   ;;  %v5042_v21 = vld [vmem:[%s6414_s14 + $0x24] ss:$8 sps:$4 sm:$0xff]   ;;  %v5046_v23 = vld [vmem:[%s6414_s14 + $0x20] ss:$8 sps:$4 sm:$0xff]  }
 0x537   : > { %3442 = vmatpush1.bf16.msra.mxu1 %v5023_v8  ;;  %3402 = vmatprep.subr.bf16.mxu0 %v5024_v9  ;;  %v5041_v20 = vld [vmem:[%s6414_s14 + $0x130] ss:$8 sps:$4 sm:$0xff]   ;;  %v5044_v22 = vld [vmem:[%s6414_s14 + $0x124] ss:$8 sps:$4 sm:$0xff]   ;;  %v5047_v24 = vld [vmem:[%s6414_s14 + $0x120] ss:$8 sps:$4 sm:$0xff]  }
 0x538   : > { %3443 = vmatprep.subr.bf16.mxu1 %v5026_v10  ;;  %v5048_v25 = vld [vmem:[%s6414_s14 + $0x14] ss:$8 sps:$4 sm:$0xff]   ;;  %v5052_v27 = vld [vmem:[%s6414_s14 + $0x10] ss:$8 sps:$4 sm:$0xff]   ;;  %v5054_v30 = vld [vmem:[%s6414_s14 + $0x4] ss:$8 sps:$4 sm:$0xff]  }
 0x539   : > { %v5050_v26 = vld [vmem:[%s6414_s14 + $0x114] ss:$8 sps:$4 sm:$0xff]   ;;  %v5053_v29 = vld [vmem:[%s6414_s14 + $0x110] ss:$8 sps:$4 sm:$0xff]   ;;  %v5056_v31 = vld [vmem:[%s6414_s14 + $0x104] ss:$8 sps:$4 sm:$0xff]  }
 0x53a   : > { %3403 = vmatpush1.bf16.msra.mxu0 %v5028_v11  ;;  %v5058_v32 = vld [vmem:[%s6414_s14] ss:$8 sps:$4 sm:$0xff]   ;;  %v5060_v34 = vld [vmem:[%s6414_s14 + $0xf4] ss:$8 sps:$4 sm:$0xff]   ;;  %v5064_v36 = vld [vmem:[%s6414_s14 + $0xf0] ss:$8 sps:$4 sm:$0xff]  }
 0x53b   : > { %3444 = vmatpush1.bf16.msra.mxu1 %v5029_v12  ;;  %3404 = vmatprep.subr.bf16.mxu0 %v5030_v13  ;;  %v5059_v33 = vld [vmem:[%s6414_s14 + $0x100] ss:$8 sps:$4 sm:$0xff]   ;;  %v5062_v35 = vld [vmem:[%s6414_s14 + $0x1f4] ss:$8 sps:$4 sm:$0xff]   ;;  %v5065_v38 = vld [vmem:[%s6414_s14 + $0x1f0] ss:$8 sps:$4 sm:$0xff]  }
 0x53c   : > { %3445 = vmatprep.subr.bf16.mxu1 %v5032_v14  ;;  %v5066_v37 = vld [vmem:[%s6414_s14 + $0xe4] ss:$8 sps:$4 sm:$0xff]   ;;  %v5070_v40 = vld [vmem:[%s6414_s14 + $0xe0] ss:$8 sps:$4 sm:$0xff]   ;;  %v5072_v42 = vld [vmem:[%s6414_s14 + $0xd4] ss:$8 sps:$4 sm:$0xff]  }
 0x53d   : > { %v5068_v39 = vld [vmem:[%s6414_s14 + $0x1e4] ss:$8 sps:$4 sm:$0xff]   ;;  %v5071_v41 = vld [vmem:[%s6414_s14 + $0x1e0] ss:$8 sps:$4 sm:$0xff]   ;;  %v5074_v43 = vld [vmem:[%s6414_s14 + $0x1d4] ss:$8 sps:$4 sm:$0xff]  }
 0x53e   : > { %3405 = vmatpush1.bf16.msra.mxu0 %v5034_v15  ;;  %v5076_v44 = vld [vmem:[%s6414_s14 + $0xd0] ss:$8 sps:$4 sm:$0xff]   ;;  %v5078_v46 = vld [vmem:[%s6414_s14 + $0xc4] ss:$8 sps:$4 sm:$0xff]   ;;  %v5082_v51 = vld [vmem:[%s6414_s14 + $0xc0] ss:$8 sps:$4 sm:$0xff]  }
 0x53f   : > { %3446 = vmatpush1.bf16.msra.mxu1 %v5035_v16  ;;  %3406 = vmatprep.subr.bf16.mxu0 %v5036_v17  ;;  %v5077_v45 = vld [vmem:[%s6414_s14 + $0x1d0] ss:$8 sps:$4 sm:$0xff]   ;;  %v5080_v47 = vld [vmem:[%s6414_s14 + $0x1c4] ss:$8 sps:$4 sm:$0xff]   ;;  %v5083_v52 = vld [vmem:[%s6414_s14 + $0x1c0] ss:$8 sps:$4 sm:$0xff]  }
 0x540   : > { %3447 = vmatprep.subr.bf16.mxu1 %v5038_v18  ;;  %v2186_v48 = vld [vmem:[#allocation2 + $0x28] sm:$0xff]  ;;  %v2187_v50 = vld [vmem:[#allocation2 + $0x10] sm:$0xff]  ;;  %p4465_p5 = scmp.ne.s32.totalorder %s6089_s3, 4 }
 0x541   : > { %v4246_v49 = vcombine.high %v2186_v48, %v2186_v48  ;;  %v4248_v53 = vcombine.high %v2187_v50, %v2187_v50  ;;  %v5084_v54 = vld [vmem:[%s6414_s14 + $0xb4] ss:$8 sps:$4 sm:$0xff]   ;;  %v5088_v56 = vld [vmem:[%s6414_s14 + $0xb0] ss:$8 sps:$4 sm:$0xff]   ;;  %v5090_v58 = vld [vmem:[%s6414_s14 + $0xa4] ss:$8 sps:$4 sm:$0xff]   ;;  %v4245_v7 = vcombine.low %v2186_v48, %v2186_v48  ;;  %v4247_v8 = vcombine.low %v2187_v50, %v2187_v50 }
 0x542   : > { %3407 = vmatpush1.bf16.msra.mxu0 %v5040_v19  ;;  %v5086_v55 = vld [vmem:[%s6414_s14 + $0x1b4] ss:$8 sps:$4 sm:$0xff]   ;;  %v5089_v57 = vld [vmem:[%s6414_s14 + $0x1b0] ss:$8 sps:$4 sm:$0xff]   ;;  %v5092_v59 = vld [vmem:[%s6414_s14 + $0x1a4] ss:$8 sps:$4 sm:$0xff]  }
 0x543   : > { %3448 = vmatpush1.bf16.msra.mxu1 %v5041_v20  ;;  %3408 = vmatprep.subr.bf16.mxu0 %v5042_v21  ;;  %v5094_v60 = vld [vmem:[%s6414_s14 + $0xa0] ss:$8 sps:$4 sm:$0xff]   ;;  %v5096_v62 = vld [vmem:[%s6414_s14 + $0x94] ss:$8 sps:$4 sm:$0xff]   ;;  %v5100_v0 = vld [vmem:[%s6414_s14 + $0x90] ss:$8 sps:$4 sm:$0xff]  }
 0x544   : > { %3449 = vmatprep.subr.bf16.mxu1 %v5044_v22  ;;  %3430 = vmatprep.mubr.bf16.mxu0 %v4246_v49  ;;  %v5095_v61 = vld [vmem:[%s6414_s14 + $0x1a0] ss:$8 sps:$4 sm:$0xff]   ;;  %v5098_v63 = vld [vmem:[%s6414_s14 + $0x194] ss:$8 sps:$4 sm:$0xff]   ;;  %v5101_v28 = vld [vmem:[%s6414_s14 + $0x190] ss:$8 sps:$4 sm:$0xff]  }
 0x545   : > { %3471 = vmatprep.mubr.bf16.mxu1 %v4248_v53  ;;  %v5102_v1 = vld [vmem:[%s6414_s14 + $0x84] ss:$8 sps:$4 sm:$0xff]   ;;  %v5106_v3 = vld [vmem:[%s6414_s14 + $0x80] ss:$8 sps:$4 sm:$0xff]   ;;  %v5114_v5 = vld [vmem:[%s6414_s14 + $0x274] ss:$8 sps:$4 sm:$0xff]  }
 0x546   : > { %3409 = vmatpush1.bf16.msra.mxu0 %v5046_v23  ;;  %v5104_v2 = vld [vmem:[%s6414_s14 + $0x184] ss:$8 sps:$4 sm:$0xff]   ;;  %v5107_v4 = vld [vmem:[%s6414_s14 + $0x180] ss:$8 sps:$4 sm:$0xff]   ;;  %v5117_v6 = vld [vmem:[%s6414_s14 + $0x374] ss:$8 sps:$4 sm:$0xff]  }
 0x547   : > { %3450 = vmatpush1.bf16.msra.mxu1 %v5047_v24  ;;  %3410 = vmatprep.subr.bf16.mxu0 %v5048_v25  ;;  %v5112_v9 = vld [vmem:[%s6414_s14 + $0x270] ss:$8 sps:$4 sm:$0xff]   ;;  %v5120_v11 = vld [vmem:[%s6414_s14 + $0x264] ss:$8 sps:$4 sm:$0xff]   ;;  %v5118_v13 = vld [vmem:[%s6414_s14 + $0x260] ss:$8 sps:$4 sm:$0xff]  }
 0x548   : > { %3451 = vmatprep.subr.bf16.mxu1 %v5050_v26  ;;  %v5115_v10 = vld [vmem:[%s6414_s14 + $0x370] ss:$8 sps:$4 sm:$0xff]   ;;  %v5123_v12 = vld [vmem:[%s6414_s14 + $0x364] ss:$8 sps:$4 sm:$0xff]   ;;  %v5121_v14 = vld [vmem:[%s6414_s14 + $0x360] ss:$8 sps:$4 sm:$0xff]  }
 0x549   : > { %v5126_v15 = vld [vmem:[%s6414_s14 + $0x254] ss:$8 sps:$4 sm:$0xff]   ;;  %v5124_v17 = vld [vmem:[%s6414_s14 + $0x250] ss:$8 sps:$4 sm:$0xff]   ;;  %v5132_v19 = vld [vmem:[%s6414_s14 + $0x244] ss:$8 sps:$4 sm:$0xff]  }
 0x54a   : > { %3411 = vmatpush1.bf16.msra.mxu0 %v5052_v27  ;;  %v5129_v16 = vld [vmem:[%s6414_s14 + $0x354] ss:$8 sps:$4 sm:$0xff]   ;;  %v5127_v18 = vld [vmem:[%s6414_s14 + $0x350] ss:$8 sps:$4 sm:$0xff]   ;;  %v5135_v20 = vld [vmem:[%s6414_s14 + $0x344] ss:$8 sps:$4 sm:$0xff]  }
 0x54b   : > { %3452 = vmatpush1.bf16.msra.mxu1 %v5053_v29  ;;  %3412 = vmatprep.subr.bf16.mxu0 %v5054_v30  ;;  %v5130_v21 = vld [vmem:[%s6414_s14 + $0x240] ss:$8 sps:$4 sm:$0xff]   ;;  %v5138_v23 = vld [vmem:[%s6414_s14 + $0x234] ss:$8 sps:$4 sm:$0xff]   ;;  %v5136_v25 = vld [vmem:[%s6414_s14 + $0x230] ss:$8 sps:$4 sm:$0xff]  }
 0x54c   : > { %3453 = vmatprep.subr.bf16.mxu1 %v5056_v31  ;;  %v5133_v22 = vld [vmem:[%s6414_s14 + $0x340] ss:$8 sps:$4 sm:$0xff]   ;;  %v5141_v24 = vld [vmem:[%s6414_s14 + $0x334] ss:$8 sps:$4 sm:$0xff]   ;;  %v5139_v26 = vld [vmem:[%s6414_s14 + $0x330] ss:$8 sps:$4 sm:$0xff]  }
 0x54d   : > { %v5144_v27 = vld [vmem:[%s6414_s14 + $0x224] ss:$8 sps:$4 sm:$0xff]   ;;  %v5142_v30 = vld [vmem:[%s6414_s14 + $0x220] ss:$8 sps:$4 sm:$0xff]   ;;  %v5177_v53 = vld [vmem:[%s6414_s14 + $0x3d4] ss:$8 sps:$4 sm:$0xff]  }
 0x54e   : > { %3413 = vmatpush1.bf16.msra.mxu0 %v5058_v32  ;;  %v5147_v29 = vld [vmem:[%s6414_s14 + $0x324] ss:$8 sps:$4 sm:$0xff]   ;;  %v5145_v31 = vld [vmem:[%s6414_s14 + $0x320] ss:$8 sps:$4 sm:$0xff]   ;;  %v5150_v32 = vld [vmem:[%s6414_s14 + $0x214] ss:$8 sps:$4 sm:$0xff]  }
 0x54f   : > { %3454 = vmatpush1.bf16.msra.mxu1 %v5059_v33  ;;  %3414 = vmatprep.subr.bf16.mxu0 %v5060_v34  ;;  %v5153_v33 = vld [vmem:[%s6414_s14 + $0x314] ss:$8 sps:$4 sm:$0xff]   ;;  %v6643_v34 = vld [vmem:[#allocation2 + $0x8] sm:$0xff] }
 0x550   : > { %3455 = vmatprep.subr.bf16.mxu1 %v5062_v35  ;;  %v6645_v35 = vld [vmem:[#allocation2] sm:$0xff] }
 0x551   : > { %v5168_v48 = vld [vmem:[%s6414_s14 + $0x2e4] ss:$8 sps:$4 sm:$0xff]   ;;  %v5166_v50 = vld [vmem:[%s6414_s14 + $0x2e0] ss:$8 sps:$4 sm:$0xff]  }
 0x552   : > { %3415 = vmatpush2.bf16.msra.mxu0 %v5064_v36  ;;  %v5148_v36 = vld [vmem:[%s6414_s14 + $0x210] ss:$8 sps:$4 sm:$0xff]   ;;  %v5171_v49 = vld [vmem:[%s6414_s14 + $0x3e4] ss:$8 sps:$4 sm:$0xff]  }
 0x553   : > { %3456 = vmatpush2.bf16.msra.mxu1 %v5065_v38  ;;  %3416 = vmatprep.subr.bf16.mxu0 %v5066_v37  ;;  %v5151_v38 = vld [vmem:[%s6414_s14 + $0x310] ss:$8 sps:$4 sm:$0xff]   ;;  %v4250_v37 = vcombine.high %v6643_v34, %v6643_v34 }
 0x554   : > { %3457 = vmatprep.subr.bf16.mxu1 %v5068_v39  ;;  %v4252_v39 = vcombine.high %v6645_v35, %v6645_v35 }
 0x556   : > { %3417 = vmatpush2.bf16.msra.mxu0 %v5070_v40  ;;  %v5156_v40 = vld [vmem:[%s6414_s14 + $0x204] ss:$8 sps:$4 sm:$0xff]  }
 0x557   : > { %3458 = vmatpush2.bf16.msra.mxu1 %v5071_v41  ;;  %3418 = vmatprep.subr.bf16.mxu0 %v5072_v42  ;;  %v5159_v41 = vld [vmem:[%s6414_s14 + $0x304] ss:$8 sps:$4 sm:$0xff]   ;;  %v5154_v42 = vld [vmem:[%s6414_s14 + $0x200] ss:$8 sps:$4 sm:$0xff]  }
 0x558   : > { %3459 = vmatprep.subr.bf16.mxu1 %v5074_v43  ;;  %v5157_v43 = vld [vmem:[%s6414_s14 + $0x300] ss:$8 sps:$4 sm:$0xff]  }
 0x55a   : > { %3419 = vmatpush2.bf16.msra.mxu0 %v5076_v44  ;;  %v5162_v44 = vld [vmem:[%s6414_s14 + $0x2f4] ss:$8 sps:$4 sm:$0xff]  }
 0x55b   : > { %3460 = vmatpush2.bf16.msra.mxu1 %v5077_v45  ;;  %3420 = vmatprep.subr.bf16.mxu0 %v5078_v46  ;;  %v5165_v45 = vld [vmem:[%s6414_s14 + $0x3f4] ss:$8 sps:$4 sm:$0xff]   ;;  %v5160_v46 = vld [vmem:[%s6414_s14 + $0x2f0] ss:$8 sps:$4 sm:$0xff]  }
 0x55c   : > { %3461 = vmatprep.subr.bf16.mxu1 %v5080_v47  ;;  %v5163_v47 = vld [vmem:[%s6414_s14 + $0x3f0] ss:$8 sps:$4 sm:$0xff]  }
 0x55e   : > { %3421 = vmatpush2.bf16.msra.mxu0 %v5082_v51  ;;  %v5169_v51 = vld [vmem:[%s6414_s14 + $0x3e0] ss:$8 sps:$4 sm:$0xff]  }
 0x55f   : > { %3462 = vmatpush2.bf16.msra.mxu1 %v5083_v52  ;;  %3422 = vmatprep.subr.bf16.mxu0 %v5084_v54  ;;  %v5174_v52 = vld [vmem:[%s6414_s14 + $0x2d4] ss:$8 sps:$4 sm:$0xff]   ;;  %v5172_v54 = vld [vmem:[%s6414_s14 + $0x2d0] ss:$8 sps:$4 sm:$0xff]  }
 0x560   : > { %3463 = vmatprep.subr.bf16.mxu1 %v5086_v55  ;;  %v5175_v55 = vld [vmem:[%s6414_s14 + $0x3d0] ss:$8 sps:$4 sm:$0xff]  }
 0x562   : > { %3423 = vmatpush2.bf16.msra.mxu0 %v5088_v56  ;;  %v5180_v56 = vld [vmem:[%s6414_s14 + $0x2c4] ss:$8 sps:$4 sm:$0xff]  }
 0x563   : > { %3464 = vmatpush2.bf16.msra.mxu1 %v5089_v57  ;;  %3424 = vmatprep.subr.bf16.mxu0 %v5090_v58  ;;  %v5183_v57 = vld [vmem:[%s6414_s14 + $0x3c4] ss:$8 sps:$4 sm:$0xff]   ;;  %v5178_v58 = vld [vmem:[%s6414_s14 + $0x2c0] ss:$8 sps:$4 sm:$0xff]  }
 0x564   : > { %3465 = vmatprep.subr.bf16.mxu1 %v5092_v59  ;;  %v5181_v59 = vld [vmem:[%s6414_s14 + $0x3c0] ss:$8 sps:$4 sm:$0xff]  }
 0x566   : > { %3425 = vmatpush2.bf16.msra.mxu0 %v5094_v60  ;;  %v5186_v60 = vld [vmem:[%s6414_s14 + $0x2b4] ss:$8 sps:$4 sm:$0xff]  }
 0x567   : > { %3466 = vmatpush2.bf16.msra.mxu1 %v5095_v61  ;;  %3426 = vmatprep.subr.bf16.mxu0 %v5096_v62  ;;  %v5189_v61 = vld [vmem:[%s6414_s14 + $0x3b4] ss:$8 sps:$4 sm:$0xff]   ;;  %v5184_v62 = vld [vmem:[%s6414_s14 + $0x2b0] ss:$8 sps:$4 sm:$0xff]  }
 0x568   : > { %3467 = vmatprep.subr.bf16.mxu1 %v5098_v63  ;;  %v5187_v63 = vld [vmem:[%s6414_s14 + $0x3b0] ss:$8 sps:$4 sm:$0xff]  }
 0x56a   : > { %3427 = vmatpush2.bf16.msra.mxu0 %v5100_v0  ;;  %v5192_v0 = vld [vmem:[%s6414_s14 + $0x2a4] ss:$8 sps:$4 sm:$0xff]  }
 0x56b   : > { %3468 = vmatpush2.bf16.msra.mxu1 %v5101_v28  ;;  %3428 = vmatprep.subr.bf16.mxu0 %v5102_v1  ;;  %v5195_v28 = vld [vmem:[%s6414_s14 + $0x3a4] ss:$8 sps:$4 sm:$0xff]   ;;  %v5190_v1 = vld [vmem:[%s6414_s14 + $0x2a0] ss:$8 sps:$4 sm:$0xff]  }
 0x56c   : > { %3469 = vmatprep.subr.bf16.mxu1 %v5104_v2  ;;  %v5193_v2 = vld [vmem:[%s6414_s14 + $0x3a0] ss:$8 sps:$4 sm:$0xff]  }
 0x56e   : > { %3429 = vmatpush2.bf16.msra.mxu0 %v5106_v3  ;;  %v5198_v3 = vld [vmem:[%s6414_s14 + $0x294] ss:$8 sps:$4 sm:$0xff]  }
 0x56f   : > { %3470 = vmatpush2.bf16.msra.mxu1 %v5107_v4  ;;  %3480 = vmatprep.subr.bf16.mxu0 %v5114_v5  ;;  %v5201_v4 = vld [vmem:[%s6414_s14 + $0x394] ss:$8 sps:$4 sm:$0xff]   ;;  %v5196_v5 = vld [vmem:[%s6414_s14 + $0x290] ss:$8 sps:$4 sm:$0xff]  }
 0x570   : > { %3521 = vmatprep.subr.bf16.mxu1 %v5117_v6  ;;  %v5199_v6 = vld [vmem:[%s6414_s14 + $0x390] ss:$8 sps:$4 sm:$0xff]  }
 0x571   : > { %3431 = vmatmul.mubr.bf16.vlgmr.msra.gmra.mxu0 %v4245_v7  ;;  %v5204_v7 = vld [vmem:[%s6414_s14 + $0x284] ss:$8 sps:$4 sm:$0xff]  }
 0x572   : > { %3472 = vmatmul.mubr.bf16.vlgmr.msra.gmra.mxu1 %v4247_v8  ;;  %3481 = vmatpush1.bf16.msra.mxu0 %v5112_v9  ;;  %v5207_v8 = vld [vmem:[%s6414_s14 + $0x384] ss:$8 sps:$4 sm:$0xff]   ;;  %v5202_v9 = vld [vmem:[%s6414_s14 + $0x280] ss:$8 sps:$4 sm:$0xff]  }
 0x573   : > { %3522 = vmatpush1.bf16.msra.mxu1 %v5115_v10  ;;  %3482 = vmatprep.subr.bf16.mxu0 %v5120_v11  ;;  %v5205_v10 = vld [vmem:[%s6414_s14 + $0x380] ss:$8 sps:$4 sm:$0xff]   ;;  %v5214_v11 = vld [vmem:[%s6414_s14 + $0x474] ss:$8 sps:$4 sm:$0xff]  }
 0x574   : > { %3523 = vmatprep.subr.bf16.mxu1 %v5123_v12  ;;  %3512 = vmatprep.mubr.bf16.mxu0 %v4250_v37  ;;  %v5217_v12 = vld [vmem:[%s6414_s14 + $0x574] ss:$8 sps:$4 sm:$0xff]   ;;  %v5244_v37 = vld [vmem:[%s6414_s14 + $0x424] ss:$8 sps:$4 sm:$0xff]  }
 0x575   : > { %3553 = vmatprep.mubr.bf16.mxu1 %v4252_v39  ;;  %v5247_v39 = vld [vmem:[%s6414_s14 + $0x524] ss:$8 sps:$4 sm:$0xff]  }
 0x576   : > { %3483 = vmatpush1.bf16.msra.mxu0 %v5118_v13  ;;  %v4249_v13 = vcombine.low %v6643_v34, %v6643_v34  ;;  %v5238_v34 = vld [vmem:[%s6414_s14 + $0x434] ss:$8 sps:$4 sm:$0xff]  }
 0x577   : > { %3524 = vmatpush1.bf16.msra.mxu1 %v5121_v14  ;;  %3484 = vmatprep.subr.bf16.mxu0 %v5126_v15  ;;  %v4251_v14 = vcombine.low %v6645_v35, %v6645_v35  ;;  %v5212_v15 = vld [vmem:[%s6414_s14 + $0x470] ss:$8 sps:$4 sm:$0xff]   ;;  %v5241_v35 = vld [vmem:[%s6414_s14 + $0x534] ss:$8 sps:$4 sm:$0xff]  }
 0x578   : > { %3525 = vmatprep.subr.bf16.mxu1 %v5129_v16  ;;  %v5215_v16 = vld [vmem:[%s6414_s14 + $0x570] ss:$8 sps:$4 sm:$0xff]  }
 0x57a   : > { %3485 = vmatpush1.bf16.msra.mxu0 %v5124_v17  ;;  %v5220_v17 = vld [vmem:[%s6414_s14 + $0x464] ss:$8 sps:$4 sm:$0xff]  }
 0x57b   : > { %3526 = vmatpush1.bf16.msra.mxu1 %v5127_v18  ;;  %3486 = vmatprep.subr.bf16.mxu0 %v5132_v19  ;;  %v5223_v18 = vld [vmem:[%s6414_s14 + $0x564] ss:$8 sps:$4 sm:$0xff]   ;;  %v6699_v19 = vld [vmem:[#allocation2 + $0x18] sm:$0xff] }
 0x57c   : > { %3527 = vmatprep.subr.bf16.mxu1 %v5135_v20  ;;  %v6701_v20 = vld [vmem:[#allocation2 + $0x20] sm:$0xff] }
 0x57e   : > { %3487 = vmatpush1.bf16.msra.mxu0 %v5130_v21  ;;  %v5218_v21 = vld [vmem:[%s6414_s14 + $0x460] ss:$8 sps:$4 sm:$0xff]  }
 0x57f   : > { %3528 = vmatpush1.bf16.msra.mxu1 %v5133_v22  ;;  %3488 = vmatprep.subr.bf16.mxu0 %v5138_v23  ;;  %v5221_v22 = vld [vmem:[%s6414_s14 + $0x560] ss:$8 sps:$4 sm:$0xff]   ;;  %v4254_v23 = vcombine.high %v6699_v19, %v6699_v19 }
 0x580   : > { %3529 = vmatprep.subr.bf16.mxu1 %v5141_v24  ;;  %v4256_v24 = vcombine.high %v6701_v20, %v6701_v20 }
 0x582   : > { %3489 = vmatpush1.bf16.msra.mxu0 %v5136_v25  ;;  %v5226_v25 = vld [vmem:[%s6414_s14 + $0x454] ss:$8 sps:$4 sm:$0xff]  }
 0x583   : > { %3530 = vmatpush1.bf16.msra.mxu1 %v5139_v26  ;;  %3490 = vmatprep.subr.bf16.mxu0 %v5144_v27  ;;  %v5229_v26 = vld [vmem:[%s6414_s14 + $0x554] ss:$8 sps:$4 sm:$0xff]   ;;  %v5224_v27 = vld [vmem:[%s6414_s14 + $0x450] ss:$8 sps:$4 sm:$0xff]  }
 0x584   : > { %3531 = vmatprep.subr.bf16.mxu1 %v5147_v29  ;;  %v5227_v29 = vld [vmem:[%s6414_s14 + $0x550] ss:$8 sps:$4 sm:$0xff]  }
 0x586   : > { %3491 = vmatpush1.bf16.msra.mxu0 %v5142_v30  ;;  %v5232_v30 = vld [vmem:[%s6414_s14 + $0x444] ss:$8 sps:$4 sm:$0xff]  }
 0x587   : > { %3532 = vmatpush1.bf16.msra.mxu1 %v5145_v31  ;;  %3492 = vmatprep.subr.bf16.mxu0 %v5150_v32  ;;  %v5235_v31 = vld [vmem:[%s6414_s14 + $0x544] ss:$8 sps:$4 sm:$0xff]   ;;  %v5230_v32 = vld [vmem:[%s6414_s14 + $0x440] ss:$8 sps:$4 sm:$0xff]  }
 0x588   : > { %3533 = vmatprep.subr.bf16.mxu1 %v5153_v33  ;;  %v5233_v33 = vld [vmem:[%s6414_s14 + $0x540] ss:$8 sps:$4 sm:$0xff]  }
 0x58a   : > { %3493 = vmatpush1.bf16.msra.mxu0 %v5148_v36  ;;  %v5236_v36 = vld [vmem:[%s6414_s14 + $0x430] ss:$8 sps:$4 sm:$0xff]  }
 0x58b   : > { %3534 = vmatpush1.bf16.msra.mxu1 %v5151_v38  ;;  %3494 = vmatprep.subr.bf16.mxu0 %v5156_v40  ;;  %v5239_v38 = vld [vmem:[%s6414_s14 + $0x530] ss:$8 sps:$4 sm:$0xff]   ;;  %v5242_v40 = vld [vmem:[%s6414_s14 + $0x420] ss:$8 sps:$4 sm:$0xff]  }
 0x58c   : > { %3535 = vmatprep.subr.bf16.mxu1 %v5159_v41  ;;  %v5245_v41 = vld [vmem:[%s6414_s14 + $0x520] ss:$8 sps:$4 sm:$0xff]  }
 0x58e   : > { %3495 = vmatpush1.bf16.msra.mxu0 %v5154_v42  ;;  %v5250_v42 = vld [vmem:[%s6414_s14 + $0x414] ss:$8 sps:$4 sm:$0xff]  }
 0x58f   : > { %3536 = vmatpush1.bf16.msra.mxu1 %v5157_v43  ;;  %3496 = vmatprep.subr.bf16.mxu0 %v5162_v44  ;;  %v5253_v43 = vld [vmem:[%s6414_s14 + $0x514] ss:$8 sps:$4 sm:$0xff]   ;;  %v5248_v44 = vld [vmem:[%s6414_s14 + $0x410] ss:$8 sps:$4 sm:$0xff]  }
 0x590   : > { %3537 = vmatprep.subr.bf16.mxu1 %v5165_v45  ;;  %v5251_v45 = vld [vmem:[%s6414_s14 + $0x510] ss:$8 sps:$4 sm:$0xff]  }
 0x592   : > { %3497 = vmatpush2.bf16.msra.mxu0 %v5160_v46  ;;  %v5256_v46 = vld [vmem:[%s6414_s14 + $0x404] ss:$8 sps:$4 sm:$0xff]  }
 0x593   : > { %3538 = vmatpush2.bf16.msra.mxu1 %v5163_v47  ;;  %3498 = vmatprep.subr.bf16.mxu0 %v5168_v48  ;;  %v5259_v47 = vld [vmem:[%s6414_s14 + $0x504] ss:$8 sps:$4 sm:$0xff]   ;;  %v5254_v48 = vld [vmem:[%s6414_s14 + $0x400] ss:$8 sps:$4 sm:$0xff]  }
 0x594   : > { %3539 = vmatprep.subr.bf16.mxu1 %v5171_v49  ;;  %v5257_v49 = vld [vmem:[%s6414_s14 + $0x500] ss:$8 sps:$4 sm:$0xff]  }
 0x596   : > { %3499 = vmatpush2.bf16.msra.mxu0 %v5166_v50  ;;  %v5262_v50 = vld [vmem:[%s6414_s14 + $0x4f4] ss:$8 sps:$4 sm:$0xff]  }
 0x597   : > { %3540 = vmatpush2.bf16.msra.mxu1 %v5169_v51  ;;  %3500 = vmatprep.subr.bf16.mxu0 %v5174_v52  ;;  %v5265_v51 = vld [vmem:[%s6414_s14 + $0x5f4] ss:$8 sps:$4 sm:$0xff]   ;;  %v5260_v52 = vld [vmem:[%s6414_s14 + $0x4f0] ss:$8 sps:$4 sm:$0xff]  }
 0x598   : > { %3541 = vmatprep.subr.bf16.mxu1 %v5177_v53  ;;  %v5263_v53 = vld [vmem:[%s6414_s14 + $0x5f0] ss:$8 sps:$4 sm:$0xff]  }
 0x59a   : > { %3501 = vmatpush2.bf16.msra.mxu0 %v5172_v54  ;;  %v5268_v54 = vld [vmem:[%s6414_s14 + $0x4e4] ss:$8 sps:$4 sm:$0xff]  }
 0x59b   : > { %3542 = vmatpush2.bf16.msra.mxu1 %v5175_v55  ;;  %3502 = vmatprep.subr.bf16.mxu0 %v5180_v56  ;;  %v5271_v55 = vld [vmem:[%s6414_s14 + $0x5e4] ss:$8 sps:$4 sm:$0xff]   ;;  %v5266_v56 = vld [vmem:[%s6414_s14 + $0x4e0] ss:$8 sps:$4 sm:$0xff]  }
 0x59c   : > { %3543 = vmatprep.subr.bf16.mxu1 %v5183_v57  ;;  %v5269_v57 = vld [vmem:[%s6414_s14 + $0x5e0] ss:$8 sps:$4 sm:$0xff]  }
 0x59e   : > { %3503 = vmatpush2.bf16.msra.mxu0 %v5178_v58  ;;  %v5274_v58 = vld [vmem:[%s6414_s14 + $0x4d4] ss:$8 sps:$4 sm:$0xff]  }
 0x59f   : > { %3544 = vmatpush2.bf16.msra.mxu1 %v5181_v59  ;;  %3504 = vmatprep.subr.bf16.mxu0 %v5186_v60  ;;  %v5277_v59 = vld [vmem:[%s6414_s14 + $0x5d4] ss:$8 sps:$4 sm:$0xff]   ;;  %v5272_v60 = vld [vmem:[%s6414_s14 + $0x4d0] ss:$8 sps:$4 sm:$0xff]  }
 0x5a0   : > { %3545 = vmatprep.subr.bf16.mxu1 %v5189_v61  ;;  %v5275_v61 = vld [vmem:[%s6414_s14 + $0x5d0] ss:$8 sps:$4 sm:$0xff]  }
 0x5a2   : > { %3505 = vmatpush2.bf16.msra.mxu0 %v5184_v62  ;;  %v5280_v62 = vld [vmem:[%s6414_s14 + $0x4c4] ss:$8 sps:$4 sm:$0xff]  }
 0x5a3   : > { %3546 = vmatpush2.bf16.msra.mxu1 %v5187_v63  ;;  %3506 = vmatprep.subr.bf16.mxu0 %v5192_v0  ;;  %v5283_v63 = vld [vmem:[%s6414_s14 + $0x5c4] ss:$8 sps:$4 sm:$0xff]   ;;  %v5278_v0 = vld [vmem:[%s6414_s14 + $0x4c0] ss:$8 sps:$4 sm:$0xff]  }
 0x5a4   : > { %3547 = vmatprep.subr.bf16.mxu1 %v5195_v28  ;;  %v5281_v28 = vld [vmem:[%s6414_s14 + $0x5c0] ss:$8 sps:$4 sm:$0xff]  }
 0x5a6   : > { %3507 = vmatpush2.bf16.msra.mxu0 %v5190_v1  ;;  %v5286_v1 = vld [vmem:[%s6414_s14 + $0x4b4] ss:$8 sps:$4 sm:$0xff]  }
 0x5a7   : > { %3548 = vmatpush2.bf16.msra.mxu1 %v5193_v2  ;;  %3508 = vmatprep.subr.bf16.mxu0 %v5198_v3  ;;  %v5289_v2 = vld [vmem:[%s6414_s14 + $0x5b4] ss:$8 sps:$4 sm:$0xff]   ;;  %v5284_v3 = vld [vmem:[%s6414_s14 + $0x4b0] ss:$8 sps:$4 sm:$0xff]  }
 0x5a8   : > { %3549 = vmatprep.subr.bf16.mxu1 %v5201_v4  ;;  %v5287_v4 = vld [vmem:[%s6414_s14 + $0x5b0] ss:$8 sps:$4 sm:$0xff]  }
 0x5aa   : > { %3509 = vmatpush2.bf16.msra.mxu0 %v5196_v5  ;;  %v5292_v5 = vld [vmem:[%s6414_s14 + $0x4a4] ss:$8 sps:$4 sm:$0xff]  }
 0x5ab   : > { %3550 = vmatpush2.bf16.msra.mxu1 %v5199_v6  ;;  %3510 = vmatprep.subr.bf16.mxu0 %v5204_v7  ;;  %v5295_v6 = vld [vmem:[%s6414_s14 + $0x5a4] ss:$8 sps:$4 sm:$0xff]   ;;  %v5290_v7 = vld [vmem:[%s6414_s14 + $0x4a0] ss:$8 sps:$4 sm:$0xff]  }
 0x5ac   : > { %3551 = vmatprep.subr.bf16.mxu1 %v5207_v8  ;;  %v5293_v8 = vld [vmem:[%s6414_s14 + $0x5a0] ss:$8 sps:$4 sm:$0xff]  }
 0x5ae   : > { %3511 = vmatpush2.bf16.msra.mxu0 %v5202_v9  ;;  %v5298_v9 = vld [vmem:[%s6414_s14 + $0x494] ss:$8 sps:$4 sm:$0xff]  }
 0x5af   : > { %3552 = vmatpush2.bf16.msra.mxu1 %v5205_v10  ;;  %3562 = vmatprep.subr.bf16.mxu0 %v5214_v11  ;;  %v5301_v10 = vld [vmem:[%s6414_s14 + $0x594] ss:$8 sps:$4 sm:$0xff]   ;;  %v5296_v11 = vld [vmem:[%s6414_s14 + $0x490] ss:$8 sps:$4 sm:$0xff]  }
 0x5b0   : > { %3603 = vmatprep.subr.bf16.mxu1 %v5217_v12  ;;  %v5299_v12 = vld [vmem:[%s6414_s14 + $0x590] ss:$8 sps:$4 sm:$0xff]  }
 0x5b1   : > { %3513 = vmatmul.mubr.bf16.vlgmr.msra.gmra.mxu0 %v4249_v13  ;;  %v5304_v13 = vld [vmem:[%s6414_s14 + $0x484] ss:$8 sps:$4 sm:$0xff]  }
 0x5b2   : > { %3554 = vmatmul.mubr.bf16.vlgmr.msra.gmra.mxu1 %v4251_v14  ;;  %3563 = vmatpush1.bf16.msra.mxu0 %v5212_v15  ;;  %v5307_v14 = vld [vmem:[%s6414_s14 + $0x584] ss:$8 sps:$4 sm:$0xff]   ;;  %v5302_v15 = vld [vmem:[%s6414_s14 + $0x480] ss:$8 sps:$4 sm:$0xff]  }
 0x5b3   : > { %3604 = vmatpush1.bf16.msra.mxu1 %v5215_v16  ;;  %3564 = vmatprep.subr.bf16.mxu0 %v5220_v17  ;;  %v5305_v16 = vld [vmem:[%s6414_s14 + $0x580] ss:$8 sps:$4 sm:$0xff]   ;;  %v4253_v17 = vcombine.low %v6699_v19, %v6699_v19  ;;  %v5317_v19 = vld [vmem:[%s6422_s1 + $0x28] sm:$0xff]  }
 0x5b4   : > { %3605 = vmatprep.subr.bf16.mxu1 %v5223_v18  ;;  %3594 = vmatprep.mubr.bf16.mxu0 %v4254_v23  ;;  %v4255_v18 = vcombine.low %v6701_v20, %v6701_v20  ;;  %v5314_v23 = vld [vmem:[%s6422_s1 + $0x70] sm:$0xff]   ;;  %v5318_v20 = vld [vmem:[%s6422_s1 + $0x60] sm:$0xff]  }
 0x5b5   : > { %3635 = vmatprep.mubr.bf16.mxu1 %v4256_v24  ;;  %v5315_v24 = vld [vmem:[%s6422_s1 + $0x30] sm:$0xff]  }
 0x5b6   : > { %3565 = vmatpush1.bf16.msra.mxu0 %v5218_v21  ;;  %v5312_v21 = vld [vmem:[%s6422_s1 + $0x78] sm:$0xff]  }
 0x5b7   : > { %3606 = vmatpush1.bf16.msra.mxu1 %v5221_v22  ;;  %3566 = vmatprep.subr.bf16.mxu0 %v5226_v25  ;;  %v5313_v22 = vld [vmem:[%s6422_s1 + $0x38] sm:$0xff]   ;;  %v5316_v25 = vld [vmem:[%s6422_s1 + $0x68] sm:$0xff]  }
 0x5b8   : > { %3607 = vmatprep.subr.bf16.mxu1 %v5229_v26  ;;  %v5319_v26 = vld [vmem:[%s6422_s1 + $0x20] sm:$0xff]  }
 0x5ba   : > { %3567 = vmatpush1.bf16.msra.mxu0 %v5224_v27  ;;  %v5320_v27 = vld [vmem:[%s6422_s1 + $0x58] sm:$0xff]  }
 0x5bb   : > { %3608 = vmatpush1.bf16.msra.mxu1 %v5227_v29  ;;  %3568 = vmatprep.subr.bf16.mxu0 %v5232_v30  ;;  %v5321_v29 = vld [vmem:[%s6422_s1 + $0x18] sm:$0xff]   ;;  %v2386_v30 = vlaneseq }
 0x5bc   : > { %3609 = vmatprep.subr.bf16.mxu1 %v5235_v31 }
 0x5bd   : > { %v2387_v31 = vshrl.u32 %v2386_v30, 7 }
 0x5be   : > { %3569 = vmatpush1.bf16.msra.mxu0 %v5230_v32 }
 0x5bf   : > { %3610 = vmatpush1.bf16.msra.mxu1 %v5233_v33  ;;  %3570 = vmatprep.subr.bf16.mxu0 %v5238_v34  ;;  %v2388_v32 = vsub.s32 0, %v2387_v31  ;;  %v2384_v33 = vld [vmem:[%s6420_s10] sm:$0x3]  ;;  %v2392_v34 = vsub.s32 1, %v2387_v31 }
 0x5c0   : > { %3611 = vmatprep.subr.bf16.mxu1 %v5241_v35 }
 0x5c1   : > { %v2389_v35 = vrot.slane %v2384_v33, %v2388_v32 }
 0x5c2   : > { %3571 = vmatpush1.bf16.msra.mxu0 %v5236_v36  ;;  %v5322_v36 = vld [vmem:[%s6422_s1 + $0x50] sm:$0xff]  }
 0x5c3   : > { %3612 = vmatpush1.bf16.msra.mxu1 %v5239_v38  ;;  %3572 = vmatprep.subr.bf16.mxu0 %v5244_v37  ;;  %v2393_v38 = vrot.slane %v2384_v33, %v2392_v34  ;;  %v5323_v37 = vld [vmem:[%s6422_s1 + $0x10] sm:$0xff]  }
 0x5c4   : > { %3613 = vmatprep.subr.bf16.mxu1 %v5247_v39 }
 0x5c6   : > { %3573 = vmatpush1.bf16.msra.mxu0 %v5242_v40 }
 0x5c7   : > { %3614 = vmatpush1.bf16.msra.mxu1 %v5245_v41  ;;  %3574 = vmatprep.subr.bf16.mxu0 %v5250_v42 }
 0x5c8   : > { %3615 = vmatprep.subr.bf16.mxu1 %v5253_v43 }
 0x5ca   : > { %3575 = vmatpush1.bf16.msra.mxu0 %v5248_v44  ;;  %v5324_v44 = vld [vmem:[%s6422_s1 + $0x48] sm:$0xff]  }
 0x5cb   : > { %3616 = vmatpush1.bf16.msra.mxu1 %v5251_v45  ;;  %3576 = vmatprep.subr.bf16.mxu0 %v5256_v46 }
 0x5cc   : > { %3617 = vmatprep.subr.bf16.mxu1 %v5259_v47  ;;  %v5325_v47 = vld [vmem:[%s6422_s1 + $0x8] sm:$0xff]  }
 0x5ce   : > { %3577 = vmatpush1.bf16.msra.mxu0 %v5254_v48 }
 0x5cf   : > { %3618 = vmatpush1.bf16.msra.mxu1 %v5257_v49  ;;  %3578 = vmatprep.subr.bf16.mxu0 %v5262_v50 }
 0x5d0   : > { %3619 = vmatprep.subr.bf16.mxu1 %v5265_v51 }
 0x5d2   : > { %3579 = vmatpush2.bf16.msra.mxu0 %v5260_v52 }
 0x5d3   : > { %3620 = vmatpush2.bf16.msra.mxu1 %v5263_v53  ;;  %3580 = vmatprep.subr.bf16.mxu0 %v5268_v54  ;;  %v5326_v53 = vld [vmem:[%s6422_s1 + $0x40] sm:$0xff]  }
 0x5d4   : > { %3621 = vmatprep.subr.bf16.mxu1 %v5271_v55  ;;  %v5327_v54 = vld [vmem:[%s6422_s1] sm:$0xff]  }
 0x5d6   : > { %3581 = vmatpush2.bf16.msra.mxu0 %v5266_v56 }
 0x5d7   : > { %3622 = vmatpush2.bf16.msra.mxu1 %v5269_v57  ;;  %3582 = vmatprep.subr.bf16.mxu0 %v5274_v58 }
 0x5d8   : > { %3623 = vmatprep.subr.bf16.mxu1 %v5277_v59 }
 0x5da   : > { %3583 = vmatpush2.bf16.msra.mxu0 %v5272_v60 }
 0x5db   : > { %3624 = vmatpush2.bf16.msra.mxu1 %v5275_v61  ;;  %3584 = vmatprep.subr.bf16.mxu0 %v5280_v62 }
 0x5dc   : > { %3625 = vmatprep.subr.bf16.mxu1 %v5283_v63 }
 0x5de   : > { %3585 = vmatpush2.bf16.msra.mxu0 %v5278_v0 }
 0x5df   : > { %3626 = vmatpush2.bf16.msra.mxu1 %v5281_v28  ;;  %3586 = vmatprep.subr.bf16.mxu0 %v5286_v1 }
 0x5e0   : > { %3627 = vmatprep.subr.bf16.mxu1 %v5289_v2 }
 0x5e2   : > { %3587 = vmatpush2.bf16.msra.mxu0 %v5284_v3 }
 0x5e3   : > { %3628 = vmatpush2.bf16.msra.mxu1 %v5287_v4  ;;  %3588 = vmatprep.subr.bf16.mxu0 %v5292_v5 }
 0x5e4   : > { %3629 = vmatprep.subr.bf16.mxu1 %v5295_v6 }
 0x5e6   : > { %3589 = vmatpush2.bf16.msra.mxu0 %v5290_v7 }
 0x5e7   : > { %3630 = vmatpush2.bf16.msra.mxu1 %v5293_v8  ;;  %3590 = vmatprep.subr.bf16.mxu0 %v5298_v9 }
 0x5e8   : > { %3631 = vmatprep.subr.bf16.mxu1 %v5301_v10 }
 0x5ea   : > { %3591 = vmatpush2.bf16.msra.mxu0 %v5296_v11 }
 0x5eb   : > { %3632 = vmatpush2.bf16.msra.mxu1 %v5299_v12  ;;  %3592 = vmatprep.subr.bf16.mxu0 %v5304_v13 }
 0x5ec   : > { %3633 = vmatprep.subr.bf16.mxu1 %v5307_v14 }
 0x5ee   : > { %3593 = vmatpush2.bf16.msra.mxu0 %v5302_v15 }
 0x5ef   : > { %3634 = vmatpush2.bf16.msra.mxu1 %v5305_v16  ;;  %4542 = vmatprep.subr.bf16.mxu0 %v5312_v21  ;;  %v3646_v21 = vld [vmem:[#allocation3] sm:$0xff] }
 0x5f1   : > { %3595 = vmatmul.mubr.bf16.vlgmr.msra.gmra.mxu0 %v4253_v17 }
 0x5f2   : > { %3636 = vmatmul.mubr.bf16.vlgmr.msra.gmra.mxu1 %v4255_v18  ;;  %4543 = vmatpush3.bf16.msra.mxu0 %v5313_v22 }
 0x5f3   : > { %4544 = vmatprep.subr.bf16.mxu0 %v5314_v23 }
 0x5f6   : > { %4545 = vmatpush3.bf16.msra.mxu0 %v5315_v24 }
 0x5f7   : > { %4546 = vmatprep.subr.bf16.mxu0 %v5316_v25 }
 0x5fa   : > { %4547 = vmatpush3.bf16.msra.mxu0 %v5317_v19 }
 0x5fb   : > { %4548 = vmatprep.subr.bf16.mxu0 %v5318_v20 }
 0x5fe   : > { %4549 = vmatpush3.bf16.msra.mxu0 %v5319_v26 }
 0x5ff   : > { %4550 = vmatprep.subr.bf16.mxu0 %v5320_v27 }
 0x602   : > { %4551 = vmatpush3.bf16.msra.mxu0 %v5321_v29 }
 0x603   : > { %4552 = vmatprep.subr.bf16.mxu0 %v5322_v36 }
 0x606   : > { %4553 = vmatpush3.bf16.msra.mxu0 %v5323_v37 }
 0x607   : > { %4554 = vmatprep.subr.bf16.mxu0 %v5324_v44 }
 0x60a   : > { %4555 = vmatpush3.bf16.msra.mxu0 %v5325_v47 }
 0x60b   : > { %4556 = vmatprep.subr.bf16.mxu0 %v5326_v53 }
 0x60e   : > { %4557 = vmatpush3.bf16.msra.mxu0 %v5327_v54 }
 0x631   : > { %v3432_v39 = vpop.f32.mrf.mxu0 }
 0x632   : > { %v3473_v40 = vpop.f32.mrf.mxu1  ;;  %v3433_v41 = vadd.f32 %v3432_v39, %v2389_v35 }
 0x633   : > { %v3434_v42 = vpop.f32.mrf.mxu0 }
 0x634   : > { %v3475_v43 = vpop.f32.mrf.mxu1  ;;  %v3474_v45 = vadd.f32 %v3473_v40, %v3433_v41  ;;  %v3435_v46 = vadd.f32 %v3434_v42, %v2393_v38 }
 0x635   : > { %v3436_v48 = vpop.f32.mrf.mxu0 }
 0x636   : > { %v3477_v49 = vpop.f32.mrf.mxu1  ;;  %v3476_v50 = vadd.f32 %v3475_v43, %v3435_v46 }
 0x637   : > { %v3437_v51 = vpop.f32.mrf.mxu0 }
 0x638   : > { %v3478_v52 = vpop.f32.mrf.mxu1 }
 0x671   : > { %v3514_v55 = vpop.f32.mrf.mxu0 }
 0x672   : > { %v3555_v56 = vpop.f32.mrf.mxu1  ;;  %v3515_v57 = vadd.f32 %v3514_v55, %v3474_v45 }
 0x673   : > { %v3516_v58 = vpop.f32.mrf.mxu0 }
 0x674   : > { %v3557_v59 = vpop.f32.mrf.mxu1  ;;  %v3556_v60 = vadd.f32 %v3555_v56, %v3515_v57  ;;  %v3517_v28 = vadd.f32 %v3516_v58, %v3476_v50 }
 0x675   : > { %v3518_v61 = vpop.f32.mrf.mxu0 }
 0x676   : > { %v3559_v62 = vpop.f32.mrf.mxu1  ;;  %v3558_v3 = vadd.f32 %v3557_v59, %v3517_v28 }
 0x677   : > { %v3519_v63 = vpop.f32.mrf.mxu0 }
 0x678   : > { %v3560_v0 = vpop.f32.mrf.mxu1 }
 0x6b1   : > { %v3596_v1 = vpop.f32.mrf.mxu0 }
 0x6b2   : > { %v3637_v2 = vpop.f32.mrf.mxu1  ;;  %v3597_v4 = vadd.f32 %v3596_v1, %v3556_v60 }
 0x6b3   : > { %v3598_v5 = vpop.f32.mrf.mxu0 }
 0x6b4   : > { %v3639_v6 = vpop.f32.mrf.mxu1  ;;  %v3638_v7 = vadd.f32 %v3637_v2, %v3597_v4  ;;  %v3599_v8 = vadd.f32 %v3598_v5, %v3558_v3 }
 0x6b5   : > { %v3600_v9 = vpop.f32.mrf.mxu0 }
 0x6b6   : > { %v3641_v10 = vpop.f32.mrf.mxu1  ;;  %v3640_v11 = vadd.f32 %v3639_v6, %v3599_v8  ;;  %v3644_v12 = vmax.f32 %v3638_v7, 0.0 }
 0x6b7   : > { %v3601_v13 = vpop.f32.mrf.mxu0 }
 0x6b8   : > { %v3642_v14 = vpop.f32.mrf.mxu1  ;;  %v3645_v15 = vmax.f32 %v3640_v11, 0.0  ;;  %v3647_v17 = vpack.c.bf16 %v3644_v12, %v3644_v12 }
 0x6ba   : > { %v3648_v16 = vpack.c.bf16 %v3645_v15, %v3645_v15 }
 0x6bc   : > { %3809 = vmatprep.mubr.bf16.mxu0 %v3648_v16 }
 0x6bd   : > { %3810 = vmatmul.mubr.bf16.vlgmr.msra.gmra.mxu0 %v3647_v17 }
 0x77d   : > { %v4558_v18 = vpop.f32.mrf.mxu0 }
 0x77f   : > { %v4559_v22 = vpop.f32.mrf.mxu0 }
 0x780   : > { %v4560_v23 = vadd.f32 %v4559_v22, %v4558_v18  ;;  %3822 = sbr.rel (%p4465_p5) target bundleno = 1955 (0x7a3), region = 184 }
 0x781   : > { %v4561_v24 = vpop.f32.mrf.mxu0 }
 0x782   : > { %v3817_v25 = vadd.f32 %v4560_v23, %v3646_v21 }
 0x783   : > { %v4562_v19 = vpop.f32.mrf.mxu0 }
 0x784   : > { %3818 = vst [vmem:[#allocation3] sm:$0xff] %v3817_v25 }
 0x785   : > { %v4466_v26 = vld [vmem:[#allocation33] ss:$0 sm:$0xff]  ;;  %v3833_v32 = vand.u32 127, %v2386_v30 }
 0x787   : > { %vm3840_vm2 = vcmp.ge.s32.totalorder %v3833_v32, 3  ;;  %vm3841_vm3 = vcmp.lt.s32.totalorder %v3833_v32, 5 }
 0x788   : > { %vm3842_vm5 = vmand %vm3840_vm2, %vm3841_vm3 }
 0x78b   : > { %v3823_v20 = vld [vmem:[#allocation3] sm:$0xff] }
 0x78c   : > { %v3831_v27 = vadd.f32 %v4466_v26, %v3823_v20 }
 0x78e   : > { %v3836_v29 = vmin.f32 %v3831_v27, 0.0  ;;  %v3835_v33 = vadd.f32 1.0, %v3831_v27  ;;  %vm3834_vm4 = vcmp.gt.f32.partialorder %v3831_v27, 0.0 }
 0x790   : > { %v3837_v31 = vmul.f32 1.442695, %v3836_v29 }
 0x792   : > { %5328 = vpow2.f32 %v3837_v31 }
 0x79f   : > { %v5329_v34 = vpop.eup %5328 }
 0x7a0   : > { %v3839_v35 = vsel %vm3834_vm4, %v3835_v33, %v5329_v34 }
 0x7a1   : > { %v3843_v36 = vsel %vm3842_vm5, %v3839_v35, %v3831_v27 }
 0x7a2   : > { %3844 = vst [vmem:[#allocation34] sm:$0xff] %v3843_v36 }
 0x7a3 PF: > { %p4856_p8 = scmp.eq.s32.totalorder %s6089_s3, 4  ;;  %s5962_s14 = smov [#allocation34]  }
 0x7a4   : > { %s3852_s10 = sshll.u32 %s5962_s14, 4  ;;  %s3853_s10 = int_to_ptr.vmem [resolvable:$true] %s3852_s10 }
 0x7a5   : > { %s5830_s1 = scalar_lea.vmem %s3853_s10, 128  ;;  %p5837_p11 = scmp.lt.s32.totalorder %s3853_s10, %s3853_s10 }
 0x7a6   : > { %p5831_p9 = scmp.ne.s32.totalorder %s3853_s10, %s5830_s1  ;;  %p5838_p13 = scmp.lt.s32.totalorder %s5830_s1, %s5830_s1 }
 0x7a8   : > { %p5832_p12 = pnand %p5831_p9, %p4856_p8  ;;  %p5839_p0 = por %p5838_p13, %p5837_p11 }
 0x7aa   : > { %p5833_p3 = pneg %p5832_p12 }
 0x7ac   : > { %p5840_p10 = pnand %p5839_p0, %p5833_p3 }
 0x7ae   : > { %5843 = shalt.err (!%p5840_p10)
}
 0x7af   : > { %s6927_s12 = sld [smem:[#allocation65_spill]] }
 0x7b5   : > { %4761 = dma.vmem_to_hbm [thread:$0]  (%p4856_p8), %s3853_s10, 128, %s6927_s12, [#allocation6]  }
 0x7b6   : > { %5915 = dma.done.wait (%p4856_p8), [#allocation6], 128  }
 0x7b7   : > { %5917 = vsyncadd (%p4856_p8), [#allocation6], 4294967168 }
 0x7b8 PF: > { %s6928_s20 = sld [smem:[#allocation47_spill]]  ;;  %p42_p1 = scmp.ge.s32.totalorder %s6201_s30, 7  }
 0x7b9   : > { %s6929_s23 = sld [smem:[#allocation49_spill]]  ;;  %s6930_s1 = smov %s5924_s22 }
 0x7ba   : > { %s6932_s24 = smov %s6201_s30  ;;  %44 = sbr.rel (!%p42_p1) target bundleno = 31 (0x1f), region = 234 }
 0x7be   : > { %s6931_s22 = smov %s6928_s20 }
 0x7bf   :  { %3865 = vsyncpa [#allocation5], 1 }
 0x7c0   :  { %3867 = vsyncpa [#allocation5 + $0x1], 1 }
 0x7c1   :  { %3868 = vsyncpa [#allocation8], 1 }
 0x7c2   :  { %3869 = vsyncpa [#allocation11], 1 }
 0x7c3   :  { %3870 = vsyncpa [#allocation14], 1 }
 0x7c4   :  { %3871 = vsyncpa [#allocation17], 1 }
 0x7c5   :  { %3872 = vsyncpa [#allocation20], 1 }
 0x7c6   :  { %3873 = vsyncpa [#allocation23], 1 }
 0x7c7   :  { %3874 = vsyncpa [#allocation26], 1 }
 0x7c8   :  { %3875 = vsyncpa [#allocation29], 1 }
 0x7c9   :  { %3877 = vsyncpa [#allocation29 + $0x1], 1 }
 0x7ca   :  { %3878 = vsyncpa [#allocation32], 1 }
 0x7cb   :  { %3880 = vsyncpa [#allocation32 + $0x1], 1 }
 0x7cc   :  { %3881 = vsyncpa [#allocation6], 1 }
 0x7cd   :  { %3883 = vsyncpa [#allocation6 + $0x1], 1 }

</bundles_post_ra>
